<compile_context>
chip_gen: v5e
topology: v5e:2x2
jax: 0.10.0
libtpu: 0.0.40
codegen_flags: <defaults>
</compile_context>

<pallas_src>
import functools

import jax
import jax.numpy as jnp
from jax.experimental import pallas as pl
from jax.experimental.pallas import tpu as pltpu


def _lista_kernel(y_ref, theta_ref, bias_ref, a_ref, out_ref, *,
                  num_iterations, lam):
    mxu_dtype = theta_ref.dtype
    z = y_ref[...].astype(jnp.float32)
    sparse = z
    a_mat = a_ref[...]                       # resident weight, native dtype
    # T is a small static trace-time constant -> unrolled loop with static
    # slices into the resident weight refs.  (For T >~ 16 a lax.fori_loop with
    # dynamic theta_ref[i] indexing would bound code size / vreg pressure.)
    for i in range(num_iterations):
        s = jnp.dot(z.astype(mxu_dtype), theta_ref[i],
                    preferred_element_type=jnp.float32)
        s = s + bias_ref[i]                               # (1, N) f32 broadcast
        # softshrink(s, lam) == max(s - lam, 0) + min(s + lam, 0)
        sparse = jnp.maximum(s - lam, 0.0) + jnp.minimum(s + lam, 0.0)
        if i + 1 < num_iterations:
            # The final `z = sparse @ A` never affects the returned value.
            z = jnp.dot(sparse.astype(mxu_dtype), a_mat,
                        preferred_element_type=jnp.float32)
    out_ref[...] = sparse.astype(out_ref.dtype)


def _vmem_limit_bytes():
    """Generation-aware VMEM limit: ~64 MiB on 128-MiB parts, ~48 MiB on v7x."""
    cap = 64 * 1024 * 1024                  # conservative default (v7x per-TC)
    try:
        cap = int(pltpu.get_tpu_info().vmem_capacity_bytes)
    except Exception:
        pass
    return min(cap * 3 // 4, 64 * 1024 * 1024)


def _pick_batch_tile(batch, n, weight_bytes, in_itemsize, vmem_limit,
                     max_rows=512):
    """Batch tile whose true VMEM footprint fits the limit with headroom."""
    # Per row: double-buffered input + output DMA tiles (native dtype) plus
    # ~3 live f32 intermediates (z, s, sparse) the kernel materializes.
    per_row = 2 * 2 * n * in_itemsize + 3 * n * 4
    headroom = 4 * 1024 * 1024
    avail = max(vmem_limit - weight_bytes - headroom, 8 * per_row)
    tb = min(batch, max_rows, avail // per_row)
    # Megacore (v7x has 2 TCs): ensure the "parallel" batch axis has >=2 grid
    # steps once there is enough work to split.  Harmless on 1-TC chips.
    if batch >= 16:
        tb = min(tb, -(-batch // 2))        # ceil(batch / 2)
    if tb >= batch:
        return batch                        # full-extent block is always legal
    if tb >= 256:
        return (tb // 256) * 256            # full MXU M granule on v6e/v7x
    if tb >= 128:
        return (tb // 128) * 128            # v5e MXU granule
    return max(8, (tb // 8) * 8)            # sublane-aligned


def _weight_spec(shape, single_buffer):
    """Constant-index (VMEM-resident) BlockSpec, single-buffered if possible."""
    index_map = lambda *_: (0,) * len(shape)
    if single_buffer:
        try:
            return pl.BlockSpec(shape, index_map, pipeline_mode=pl.Buffered(1))
        except (TypeError, AttributeError):
            pass
    return pl.BlockSpec(shape, index_map)


def _build_lista_call(B, N, T, tb, out_dtype, lam, vmem_limit, single_buffer):
    kernel = functools.partial(_lista_kernel, num_iterations=T, lam=float(lam))
    return pl.pallas_call(
        kernel,
        out_shape=jax.ShapeDtypeStruct((B, N), out_dtype),
        grid_spec=pltpu.PrefetchScalarGridSpec(
            num_scalar_prefetch=0,
            grid=(pl.cdiv(B, tb),),
            in_specs=[
                pl.BlockSpec((tb, N), lambda b: (b, 0)),        # y tile
                _weight_spec((T, N, N), single_buffer),         # theta (resident)
                _weight_spec((T, 1, N), single_buffer),         # bias  (resident)
                _weight_spec((N, N), single_buffer),            # A     (resident)
            ],
            out_specs=pl.BlockSpec((tb, N), lambda b: (b, 0)),
        ),
        compiler_params=pltpu.CompilerParams(
            dimension_semantics=("parallel",),
            vmem_limit_bytes=int(vmem_limit),
        ),
    )


def lista_v2_forward(y, A, theta, bias, sparsity_level, *,
                     mxu_dtype=jnp.bfloat16):
    """LISTAv2 forward.  y:[B,N], A:[N,N], theta:[T,N,N], bias:[T,N] -> [B,N]."""
    B, N = y.shape
    T = theta.shape[0]
    assert T >= 1
    assert A.shape == (N, N) and theta.shape == (T, N, N) and bias.shape == (T, N)

    # One-time weight casts (in a real model the params would be stored this
    # way); bias stays f32 because the bias-add / softshrink path is f32.
    theta_c = jnp.asarray(theta, dtype=mxu_dtype)
    a_c = jnp.asarray(A, dtype=mxu_dtype)
    bias3 = jnp.asarray(bias, dtype=jnp.float32).reshape(T, 1, N)

    vmem_limit = _vmem_limit_bytes()
    in_itemsize = jnp.dtype(y.dtype).itemsize

    def _run(single_buffer):
        wbuf = 1 if single_buffer else 2
        weight_bytes = wbuf * (theta_c.size * theta_c.dtype.itemsize
                               + a_c.size * a_c.dtype.itemsize
                               + bias3.size * bias3.dtype.itemsize)
        tb = _pick_batch_tile(B, N, weight_bytes, in_itemsize, vmem_limit)
        call = _build_lista_call(B, N, T, tb, y.dtype, sparsity_level,
                                 vmem_limit, single_buffer)
        return call(y, theta_c, bias3, a_c)

    try:
        return _run(single_buffer=True)
    except Exception:
        # pipeline_mode=pl.Buffered(1) rejected by this jax/Mosaic version:
        # fall back to the default double-buffered resident weights.
        return _run(single_buffer=False)


def _lista_v2_reference(y, A, theta, bias, lam, mxu_dtype=jnp.float32):
    """Pure-JAX reference; mxu_dtype controls matmul operand precision."""
    z = jnp.asarray(y, jnp.float32)
    sparse = z
    a = jnp.asarray(A, mxu_dtype)
    th = jnp.asarray(theta, mxu_dtype)
    for i in range(theta.shape[0]):
        s = jnp.dot(z.astype(mxu_dtype), th[i],
                    preferred_element_type=jnp.float32) + bias[i]
        sparse = jnp.sign(s) * jnp.maximum(jnp.abs(s) - lam, 0.0)
        z = jnp.dot(sparse.astype(mxu_dtype), a,
                    preferred_element_type=jnp.float32)
    return sparse


if __name__ == "__main__":
    key = jax.random.PRNGKey(0)
    B, N, T = 16, 128, 5
    sparsity_level = 0.1

    k1, k2, k3, k4 = jax.random.split(key, 4)
    y = jax.random.normal(k1, (B, N), dtype=jnp.float32)
    # Normalized dictionary keeps iterate magnitudes O(1).
    A = jax.random.normal(k2, (N, N), dtype=jnp.float32) / (N ** 0.5)
    # xavier_uniform-like scale for theta; small random bias (the module inits
    # bias to zeros, but the forward is valid for any parameter values).
    lim = (6.0 / (N + N)) ** 0.5
    theta = jax.random.uniform(k3, (T, N, N), dtype=jnp.float32,
                               minval=-lim, maxval=lim)
    bias = 0.01 * jax.random.normal(k4, (T, N), dtype=jnp.float32)

    out = jax.block_until_ready(
        lista_v2_forward(y, A, theta, bias, sparsity_level))

    # Matched-precision reference (bf16 MXU operands, f32 accumulation) for a
    # tight check of the kernel itself, plus the full-f32 module reference for
    # a looser check that only differs by the bf16 MXU feeding.
    ref_matched = _lista_v2_reference(y, A, theta, bias, sparsity_level,
                                      mxu_dtype=jnp.bfloat16)
    ref_f32 = _lista_v2_reference(y, A, theta, bias, sparsity_level,
                                  mxu_dtype=jnp.float32)

    assert out.shape == (B, N) and out.dtype == y.dtype
    err_matched = float(jnp.max(jnp.abs(out - ref_matched)))
    err_f32 = float(jnp.max(jnp.abs(out - ref_f32)))
    assert bool(jnp.allclose(out, ref_matched, rtol=1e-2, atol=1e-2)), err_matched
    assert bool(jnp.allclose(out, ref_f32, rtol=1e-1, atol=1e-1)), err_f32
    print("KERNEL_OK")
</pallas_src>

<mosaic_0001>
module attributes {stable_mosaic.version = 11 : i64} {
  func.func @_lista_kernel(%arg0: i32, %arg1: memref<8x128xf32, #tpu.memory_space<vmem>>, %arg2: memref<5x128x128xbf16, #tpu.memory_space<vmem>>, %arg3: memref<5x1x128xf32, #tpu.memory_space<vmem>>, %arg4: memref<128x128xbf16, #tpu.memory_space<vmem>>, %arg5: memref<8x128xf32, #tpu.memory_space<vmem>>) attributes {dimension_semantics = [#tpu.dimension_semantics<parallel>], iteration_bounds = array<i64: 2>, scalar_prefetch = 0 : i64, scratch_operands = 0 : i64, tpu.core_type = #tpu.core_type<tc>, window_params = [{transform_indices = @transform_0, window_bounds = array<i64: 8, 128>}, {pipeline_mode = #tpu.pipeline_mode<synchronous>, transform_indices = @transform_1, window_bounds = array<i64: 5, 128, 128>}, {pipeline_mode = #tpu.pipeline_mode<synchronous>, transform_indices = @transform_2, window_bounds = array<i64: 5, 1, 128>}, {pipeline_mode = #tpu.pipeline_mode<synchronous>, transform_indices = @transform_3, window_bounds = array<i64: 128, 128>}, {transform_indices = @transform_4, window_bounds = array<i64: 8, 128>}]} {
    %c0 = arith.constant 0 : index
    %c0_0 = arith.constant 0 : index
    %0 = vector.load %arg1[%c0, %c0_0] : memref<8x128xf32, #tpu.memory_space<vmem>>, vector<8x128xf32>
    %c0_1 = arith.constant 0 : index
    %c0_2 = arith.constant 0 : index
    %1 = vector.load %arg4[%c0_1, %c0_2] : memref<128x128xbf16, #tpu.memory_space<vmem>>, vector<128x128xbf16>
    %2 = arith.truncf %0 : vector<8x128xf32> to vector<8x128xbf16>
    %c0_3 = arith.constant 0 : index
    %c0_4 = arith.constant 0 : index
    %c0_5 = arith.constant 0 : index
    %3 = vector.load %arg2[%c0_3, %c0_4, %c0_5] : memref<5x128x128xbf16, #tpu.memory_space<vmem>>, vector<1x128x128xbf16>
    %4 = vector.shape_cast %3 : vector<1x128x128xbf16> to vector<128x128xbf16>
    %cst = arith.constant dense<0.000000e+00> : vector<8x128xf32>
    %5 = tpu.matmul %2, %4, %cst {dimension_numbers = #tpu.dot_dimension_numbers<[1], [0], [0], [1], [0, 0, 1, 1], [], []>} : vector<8x128xbf16>, vector<128x128xbf16>, vector<8x128xf32> -> vector<8x128xf32>
    %c0_6 = arith.constant 0 : index
    %c0_7 = arith.constant 0 : index
    %c0_8 = arith.constant 0 : index
    %6 = vector.load %arg3[%c0_6, %c0_7, %c0_8] : memref<5x1x128xf32, #tpu.memory_space<vmem>>, vector<1x1x128xf32>
    %7 = vector.shape_cast %6 : vector<1x1x128xf32> to vector<1x128xf32>
    %8 = vector.broadcast %7 : vector<1x128xf32> to vector<8x128xf32>
    %9 = arith.addf %5, %8 : vector<8x128xf32>
    %cst_9 = arith.constant 1.000000e-01 : f32
    %10 = vector.broadcast %cst_9 : f32 to vector<8x128xf32>
    %11 = arith.subf %9, %10 : vector<8x128xf32>
    %cst_10 = arith.constant 0.000000e+00 : f32
    %12 = vector.broadcast %cst_10 : f32 to vector<8x128xf32>
    %13 = arith.maximumf %11, %12 : vector<8x128xf32>
    %cst_11 = arith.constant 1.000000e-01 : f32
    %14 = vector.broadcast %cst_11 : f32 to vector<8x128xf32>
    %15 = arith.addf %9, %14 : vector<8x128xf32>
    %cst_12 = arith.constant 0.000000e+00 : f32
    %16 = vector.broadcast %cst_12 : f32 to vector<8x128xf32>
    %17 = arith.minimumf %15, %16 : vector<8x128xf32>
    %18 = arith.addf %13, %17 : vector<8x128xf32>
    %19 = arith.truncf %18 : vector<8x128xf32> to vector<8x128xbf16>
    %cst_13 = arith.constant dense<0.000000e+00> : vector<8x128xf32>
    %20 = tpu.matmul %19, %1, %cst_13 {dimension_numbers = #tpu.dot_dimension_numbers<[1], [0], [0], [1], [0, 0, 1, 1], [], []>} : vector<8x128xbf16>, vector<128x128xbf16>, vector<8x128xf32> -> vector<8x128xf32>
    %21 = arith.truncf %20 : vector<8x128xf32> to vector<8x128xbf16>
    %c1 = arith.constant 1 : index
    %c0_14 = arith.constant 0 : index
    %c0_15 = arith.constant 0 : index
    %22 = vector.load %arg2[%c1, %c0_14, %c0_15] : memref<5x128x128xbf16, #tpu.memory_space<vmem>>, vector<1x128x128xbf16>
    %23 = vector.shape_cast %22 : vector<1x128x128xbf16> to vector<128x128xbf16>
    %cst_16 = arith.constant dense<0.000000e+00> : vector<8x128xf32>
    %24 = tpu.matmul %21, %23, %cst_16 {dimension_numbers = #tpu.dot_dimension_numbers<[1], [0], [0], [1], [0, 0, 1, 1], [], []>} : vector<8x128xbf16>, vector<128x128xbf16>, vector<8x128xf32> -> vector<8x128xf32>
    %c1_17 = arith.constant 1 : index
    %c0_18 = arith.constant 0 : index
    %c0_19 = arith.constant 0 : index
    %25 = vector.load %arg3[%c1_17, %c0_18, %c0_19] : memref<5x1x128xf32, #tpu.memory_space<vmem>>, vector<1x1x128xf32>
    %26 = vector.shape_cast %25 : vector<1x1x128xf32> to vector<1x128xf32>
    %27 = vector.broadcast %26 : vector<1x128xf32> to vector<8x128xf32>
    %28 = arith.addf %24, %27 : vector<8x128xf32>
    %cst_20 = arith.constant 1.000000e-01 : f32
    %29 = vector.broadcast %cst_20 : f32 to vector<8x128xf32>
    %30 = arith.subf %28, %29 : vector<8x128xf32>
    %cst_21 = arith.constant 0.000000e+00 : f32
    %31 = vector.broadcast %cst_21 : f32 to vector<8x128xf32>
    %32 = arith.maximumf %30, %31 : vector<8x128xf32>
    %cst_22 = arith.constant 1.000000e-01 : f32
    %33 = vector.broadcast %cst_22 : f32 to vector<8x128xf32>
    %34 = arith.addf %28, %33 : vector<8x128xf32>
    %cst_23 = arith.constant 0.000000e+00 : f32
    %35 = vector.broadcast %cst_23 : f32 to vector<8x128xf32>
    %36 = arith.minimumf %34, %35 : vector<8x128xf32>
    %37 = arith.addf %32, %36 : vector<8x128xf32>
    %38 = arith.truncf %37 : vector<8x128xf32> to vector<8x128xbf16>
    %cst_24 = arith.constant dense<0.000000e+00> : vector<8x128xf32>
    %39 = tpu.matmul %38, %1, %cst_24 {dimension_numbers = #tpu.dot_dimension_numbers<[1], [0], [0], [1], [0, 0, 1, 1], [], []>} : vector<8x128xbf16>, vector<128x128xbf16>, vector<8x128xf32> -> vector<8x128xf32>
    %40 = arith.truncf %39 : vector<8x128xf32> to vector<8x128xbf16>
    %c2 = arith.constant 2 : index
    %c0_25 = arith.constant 0 : index
    %c0_26 = arith.constant 0 : index
    %41 = vector.load %arg2[%c2, %c0_25, %c0_26] : memref<5x128x128xbf16, #tpu.memory_space<vmem>>, vector<1x128x128xbf16>
    %42 = vector.shape_cast %41 : vector<1x128x128xbf16> to vector<128x128xbf16>
    %cst_27 = arith.constant dense<0.000000e+00> : vector<8x128xf32>
    %43 = tpu.matmul %40, %42, %cst_27 {dimension_numbers = #tpu.dot_dimension_numbers<[1], [0], [0], [1], [0, 0, 1, 1], [], []>} : vector<8x128xbf16>, vector<128x128xbf16>, vector<8x128xf32> -> vector<8x128xf32>
    %c2_28 = arith.constant 2 : index
    %c0_29 = arith.constant 0 : index
    %c0_30 = arith.constant 0 : index
    %44 = vector.load %arg3[%c2_28, %c0_29, %c0_30] : memref<5x1x128xf32, #tpu.memory_space<vmem>>, vector<1x1x128xf32>
    %45 = vector.shape_cast %44 : vector<1x1x128xf32> to vector<1x128xf32>
    %46 = vector.broadcast %45 : vector<1x128xf32> to vector<8x128xf32>
    %47 = arith.addf %43, %46 : vector<8x128xf32>
    %cst_31 = arith.constant 1.000000e-01 : f32
    %48 = vector.broadcast %cst_31 : f32 to vector<8x128xf32>
    %49 = arith.subf %47, %48 : vector<8x128xf32>
    %cst_32 = arith.constant 0.000000e+00 : f32
    %50 = vector.broadcast %cst_32 : f32 to vector<8x128xf32>
    %51 = arith.maximumf %49, %50 : vector<8x128xf32>
    %cst_33 = arith.constant 1.000000e-01 : f32
    %52 = vector.broadcast %cst_33 : f32 to vector<8x128xf32>
    %53 = arith.addf %47, %52 : vector<8x128xf32>
    %cst_34 = arith.constant 0.000000e+00 : f32
    %54 = vector.broadcast %cst_34 : f32 to vector<8x128xf32>
    %55 = arith.minimumf %53, %54 : vector<8x128xf32>
    %56 = arith.addf %51, %55 : vector<8x128xf32>
    %57 = arith.truncf %56 : vector<8x128xf32> to vector<8x128xbf16>
    %cst_35 = arith.constant dense<0.000000e+00> : vector<8x128xf32>
    %58 = tpu.matmul %57, %1, %cst_35 {dimension_numbers = #tpu.dot_dimension_numbers<[1], [0], [0], [1], [0, 0, 1, 1], [], []>} : vector<8x128xbf16>, vector<128x128xbf16>, vector<8x128xf32> -> vector<8x128xf32>
    %59 = arith.truncf %58 : vector<8x128xf32> to vector<8x128xbf16>
    %c3 = arith.constant 3 : index
    %c0_36 = arith.constant 0 : index
    %c0_37 = arith.constant 0 : index
    %60 = vector.load %arg2[%c3, %c0_36, %c0_37] : memref<5x128x128xbf16, #tpu.memory_space<vmem>>, vector<1x128x128xbf16>
    %61 = vector.shape_cast %60 : vector<1x128x128xbf16> to vector<128x128xbf16>
    %cst_38 = arith.constant dense<0.000000e+00> : vector<8x128xf32>
    %62 = tpu.matmul %59, %61, %cst_38 {dimension_numbers = #tpu.dot_dimension_numbers<[1], [0], [0], [1], [0, 0, 1, 1], [], []>} : vector<8x128xbf16>, vector<128x128xbf16>, vector<8x128xf32> -> vector<8x128xf32>
    %c3_39 = arith.constant 3 : index
    %c0_40 = arith.constant 0 : index
    %c0_41 = arith.constant 0 : index
    %63 = vector.load %arg3[%c3_39, %c0_40, %c0_41] : memref<5x1x128xf32, #tpu.memory_space<vmem>>, vector<1x1x128xf32>
    %64 = vector.shape_cast %63 : vector<1x1x128xf32> to vector<1x128xf32>
    %65 = vector.broadcast %64 : vector<1x128xf32> to vector<8x128xf32>
    %66 = arith.addf %62, %65 : vector<8x128xf32>
    %cst_42 = arith.constant 1.000000e-01 : f32
    %67 = vector.broadcast %cst_42 : f32 to vector<8x128xf32>
    %68 = arith.subf %66, %67 : vector<8x128xf32>
    %cst_43 = arith.constant 0.000000e+00 : f32
    %69 = vector.broadcast %cst_43 : f32 to vector<8x128xf32>
    %70 = arith.maximumf %68, %69 : vector<8x128xf32>
    %cst_44 = arith.constant 1.000000e-01 : f32
    %71 = vector.broadcast %cst_44 : f32 to vector<8x128xf32>
    %72 = arith.addf %66, %71 : vector<8x128xf32>
    %cst_45 = arith.constant 0.000000e+00 : f32
    %73 = vector.broadcast %cst_45 : f32 to vector<8x128xf32>
    %74 = arith.minimumf %72, %73 : vector<8x128xf32>
    %75 = arith.addf %70, %74 : vector<8x128xf32>
    %76 = arith.truncf %75 : vector<8x128xf32> to vector<8x128xbf16>
    %cst_46 = arith.constant dense<0.000000e+00> : vector<8x128xf32>
    %77 = tpu.matmul %76, %1, %cst_46 {dimension_numbers = #tpu.dot_dimension_numbers<[1], [0], [0], [1], [0, 0, 1, 1], [], []>} : vector<8x128xbf16>, vector<128x128xbf16>, vector<8x128xf32> -> vector<8x128xf32>
    %78 = arith.truncf %77 : vector<8x128xf32> to vector<8x128xbf16>
    %c4 = arith.constant 4 : index
    %c0_47 = arith.constant 0 : index
    %c0_48 = arith.constant 0 : index
    %79 = vector.load %arg2[%c4, %c0_47, %c0_48] : memref<5x128x128xbf16, #tpu.memory_space<vmem>>, vector<1x128x128xbf16>
    %80 = vector.shape_cast %79 : vector<1x128x128xbf16> to vector<128x128xbf16>
    %cst_49 = arith.constant dense<0.000000e+00> : vector<8x128xf32>
    %81 = tpu.matmul %78, %80, %cst_49 {dimension_numbers = #tpu.dot_dimension_numbers<[1], [0], [0], [1], [0, 0, 1, 1], [], []>} : vector<8x128xbf16>, vector<128x128xbf16>, vector<8x128xf32> -> vector<8x128xf32>
    %c4_50 = arith.constant 4 : index
    %c0_51 = arith.constant 0 : index
    %c0_52 = arith.constant 0 : index
    %82 = vector.load %arg3[%c4_50, %c0_51, %c0_52] : memref<5x1x128xf32, #tpu.memory_space<vmem>>, vector<1x1x128xf32>
    %83 = vector.shape_cast %82 : vector<1x1x128xf32> to vector<1x128xf32>
    %84 = vector.broadcast %83 : vector<1x128xf32> to vector<8x128xf32>
    %85 = arith.addf %81, %84 : vector<8x128xf32>
    %cst_53 = arith.constant 1.000000e-01 : f32
    %86 = vector.broadcast %cst_53 : f32 to vector<8x128xf32>
    %87 = arith.subf %85, %86 : vector<8x128xf32>
    %cst_54 = arith.constant 0.000000e+00 : f32
    %88 = vector.broadcast %cst_54 : f32 to vector<8x128xf32>
    %89 = arith.maximumf %87, %88 : vector<8x128xf32>
    %cst_55 = arith.constant 1.000000e-01 : f32
    %90 = vector.broadcast %cst_55 : f32 to vector<8x128xf32>
    %91 = arith.addf %85, %90 : vector<8x128xf32>
    %cst_56 = arith.constant 0.000000e+00 : f32
    %92 = vector.broadcast %cst_56 : f32 to vector<8x128xf32>
    %93 = arith.minimumf %91, %92 : vector<8x128xf32>
    %94 = arith.addf %89, %93 : vector<8x128xf32>
    %c0_57 = arith.constant 0 : index
    %c0_58 = arith.constant 0 : index
    %95 = vector.load %arg5[%c0_57, %c0_58] : memref<8x128xf32, #tpu.memory_space<vmem>>, vector<8x128xf32>
    tpu.vector_store %arg5[%c0_57, %c0_58], %94 {strides = array<i32>} : memref<8x128xf32, #tpu.memory_space<vmem>>, vector<8x128xf32>,
    return
  }
  func.func @transform_0(%arg0: i32) -> (i32, i32) {
    %c0_i32 = arith.constant 0 : i32
    %c0_i32_0 = arith.constant 0 : i32
    return %arg0, %c0_i32 : i32, i32
  }
  func.func @transform_1(%arg0: i32) -> (i32, i32, i32) {
    %c0_i32 = arith.constant 0 : i32
    %c0_i32_0 = arith.constant 0 : i32
    %c0_i32_1 = arith.constant 0 : i32
    %c0_i32_2 = arith.constant 0 : i32
    return %c0_i32, %c0_i32_0, %c0_i32_1 : i32, i32, i32
  }
  func.func @transform_2(%arg0: i32) -> (i32, i32, i32) {
    %c0_i32 = arith.constant 0 : i32
    %c0_i32_0 = arith.constant 0 : i32
    %c0_i32_1 = arith.constant 0 : i32
    %c0_i32_2 = arith.constant 0 : i32
    return %c0_i32, %c0_i32_0, %c0_i32_1 : i32, i32, i32
  }
  func.func @transform_3(%arg0: i32) -> (i32, i32) {
    %c0_i32 = arith.constant 0 : i32
    %c0_i32_0 = arith.constant 0 : i32
    %c0_i32_1 = arith.constant 0 : i32
    return %c0_i32, %c0_i32_0 : i32, i32
  }
  func.func @transform_4(%arg0: i32) -> (i32, i32) {
    %c0_i32 = arith.constant 0 : i32
    %c0_i32_0 = arith.constant 0 : i32
    return %arg0, %c0_i32 : i32, i32
  }
}

module attributes {stable_mosaic.version = 11 : i64} {
  func.func @_lista_kernel(%arg0: i32, %arg1: memref<8x128xf32, #tpu.memory_space<vmem>>, %arg2: memref<5x128x128xbf16, #tpu.memory_space<vmem>>, %arg3: memref<5x1x128xf32, #tpu.memory_space<vmem>>, %arg4: memref<128x128xbf16, #tpu.memory_space<vmem>>, %arg5: memref<8x128xf32, #tpu.memory_space<vmem>>) attributes {dimension_semantics = [#tpu.dimension_semantics<parallel>], iteration_bounds = array<i64: 2>, scalar_prefetch = 0 : i64, scratch_operands = 0 : i64, tpu.core_type = #tpu.core_type<tc>, window_params = [{transform_indices = @transform_0, window_bounds = array<i64: 8, 128>}, {pipeline_mode = #tpu.pipeline_mode<synchronous>, transform_indices = @transform_1, window_bounds = array<i64: 5, 128, 128>}, {pipeline_mode = #tpu.pipeline_mode<synchronous>, transform_indices = @transform_2, window_bounds = array<i64: 5, 1, 128>}, {pipeline_mode = #tpu.pipeline_mode<synchronous>, transform_indices = @transform_3, window_bounds = array<i64: 128, 128>}, {transform_indices = @transform_4, window_bounds = array<i64: 8, 128>}]} {
    %c0 = arith.constant 0 : index
    %c0_0 = arith.constant 0 : index
    %0 = vector.load %arg1[%c0, %c0_0] : memref<8x128xf32, #tpu.memory_space<vmem>>, vector<8x128xf32>
    %c0_1 = arith.constant 0 : index
    %c0_2 = arith.constant 0 : index
    %1 = vector.load %arg4[%c0_1, %c0_2] : memref<128x128xbf16, #tpu.memory_space<vmem>>, vector<128x128xbf16>
    %2 = arith.truncf %0 : vector<8x128xf32> to vector<8x128xbf16>
    %c0_3 = arith.constant 0 : index
    %c0_4 = arith.constant 0 : index
    %c0_5 = arith.constant 0 : index
    %3 = vector.load %arg2[%c0_3, %c0_4, %c0_5] : memref<5x128x128xbf16, #tpu.memory_space<vmem>>, vector<1x128x128xbf16>
    %4 = vector.shape_cast %3 : vector<1x128x128xbf16> to vector<128x128xbf16>
    %cst = arith.constant dense<0.000000e+00> : vector<8x128xf32>
    %5 = tpu.matmul %2, %4, %cst {dimension_numbers = #tpu.dot_dimension_numbers<[1], [0], [0], [1], [0, 0, 1, 1], [], []>} : vector<8x128xbf16>, vector<128x128xbf16>, vector<8x128xf32> -> vector<8x128xf32>
    %c0_6 = arith.constant 0 : index
    %c0_7 = arith.constant 0 : index
    %c0_8 = arith.constant 0 : index
    %6 = vector.load %arg3[%c0_6, %c0_7, %c0_8] : memref<5x1x128xf32, #tpu.memory_space<vmem>>, vector<1x1x128xf32>
    %7 = vector.shape_cast %6 : vector<1x1x128xf32> to vector<1x128xf32>
    %8 = vector.broadcast %7 : vector<1x128xf32> to vector<8x128xf32>
    %9 = arith.addf %5, %8 : vector<8x128xf32>
    %cst_9 = arith.constant 1.000000e-01 : f32
    %10 = vector.broadcast %cst_9 : f32 to vector<8x128xf32>
    %11 = arith.subf %9, %10 : vector<8x128xf32>
    %cst_10 = arith.constant 0.000000e+00 : f32
    %12 = vector.broadcast %cst_10 : f32 to vector<8x128xf32>
    %13 = arith.maximumf %11, %12 : vector<8x128xf32>
    %cst_11 = arith.constant 1.000000e-01 : f32
    %14 = vector.broadcast %cst_11 : f32 to vector<8x128xf32>
    %15 = arith.addf %9, %14 : vector<8x128xf32>
    %cst_12 = arith.constant 0.000000e+00 : f32
    %16 = vector.broadcast %cst_12 : f32 to vector<8x128xf32>
    %17 = arith.minimumf %15, %16 : vector<8x128xf32>
    %18 = arith.addf %13, %17 : vector<8x128xf32>
    %19 = arith.truncf %18 : vector<8x128xf32> to vector<8x128xbf16>
    %cst_13 = arith.constant dense<0.000000e+00> : vector<8x128xf32>
    %20 = tpu.matmul %19, %1, %cst_13 {dimension_numbers = #tpu.dot_dimension_numbers<[1], [0], [0], [1], [0, 0, 1, 1], [], []>} : vector<8x128xbf16>, vector<128x128xbf16>, vector<8x128xf32> -> vector<8x128xf32>
    %21 = arith.truncf %20 : vector<8x128xf32> to vector<8x128xbf16>
    %c1 = arith.constant 1 : index
    %c0_14 = arith.constant 0 : index
    %c0_15 = arith.constant 0 : index
    %22 = vector.load %arg2[%c1, %c0_14, %c0_15] : memref<5x128x128xbf16, #tpu.memory_space<vmem>>, vector<1x128x128xbf16>
    %23 = vector.shape_cast %22 : vector<1x128x128xbf16> to vector<128x128xbf16>
    %cst_16 = arith.constant dense<0.000000e+00> : vector<8x128xf32>
    %24 = tpu.matmul %21, %23, %cst_16 {dimension_numbers = #tpu.dot_dimension_numbers<[1], [0], [0], [1], [0, 0, 1, 1], [], []>} : vector<8x128xbf16>, vector<128x128xbf16>, vector<8x128xf32> -> vector<8x128xf32>
    %c1_17 = arith.constant 1 : index
    %c0_18 = arith.constant 0 : index
    %c0_19 = arith.constant 0 : index
    %25 = vector.load %arg3[%c1_17, %c0_18, %c0_19] : memref<5x1x128xf32, #tpu.memory_space<vmem>>, vector<1x1x128xf32>
    %26 = vector.shape_cast %25 : vector<1x1x128xf32> to vector<1x128xf32>
    %27 = vector.broadcast %26 : vector<1x128xf32> to vector<8x128xf32>
    %28 = arith.addf %24, %27 : vector<8x128xf32>
    %cst_20 = arith.constant 1.000000e-01 : f32
    %29 = vector.broadcast %cst_20 : f32 to vector<8x128xf32>
    %30 = arith.subf %28, %29 : vector<8x128xf32>
    %cst_21 = arith.constant 0.000000e+00 : f32
    %31 = vector.broadcast %cst_21 : f32 to vector<8x128xf32>
    %32 = arith.maximumf %30, %31 : vector<8x128xf32>
    %cst_22 = arith.constant 1.000000e-01 : f32
    %33 = vector.broadcast %cst_22 : f32 to vector<8x128xf32>
    %34 = arith.addf %28, %33 : vector<8x128xf32>
    %cst_23 = arith.constant 0.000000e+00 : f32
    %35 = vector.broadcast %cst_23 : f32 to vector<8x128xf32>
    %36 = arith.minimumf %34, %35 : vector<8x128xf32>
    %37 = arith.addf %32, %36 : vector<8x128xf32>
    %38 = arith.truncf %37 : vector<8x128xf32> to vector<8x128xbf16>
    %cst_24 = arith.constant dense<0.000000e+00> : vector<8x128xf32>
    %39 = tpu.matmul %38, %1, %cst_24 {dimension_numbers = #tpu.dot_dimension_numbers<[1], [0], [0], [1], [0, 0, 1, 1], [], []>} : vector<8x128xbf16>, vector<128x128xbf16>, vector<8x128xf32> -> vector<8x128xf32>
    %40 = arith.truncf %39 : vector<8x128xf32> to vector<8x128xbf16>
    %c2 = arith.constant 2 : index
    %c0_25 = arith.constant 0 : index
    %c0_26 = arith.constant 0 : index
    %41 = vector.load %arg2[%c2, %c0_25, %c0_26] : memref<5x128x128xbf16, #tpu.memory_space<vmem>>, vector<1x128x128xbf16>
    %42 = vector.shape_cast %41 : vector<1x128x128xbf16> to vector<128x128xbf16>
    %cst_27 = arith.constant dense<0.000000e+00> : vector<8x128xf32>
    %43 = tpu.matmul %40, %42, %cst_27 {dimension_numbers = #tpu.dot_dimension_numbers<[1], [0], [0], [1], [0, 0, 1, 1], [], []>} : vector<8x128xbf16>, vector<128x128xbf16>, vector<8x128xf32> -> vector<8x128xf32>
    %c2_28 = arith.constant 2 : index
    %c0_29 = arith.constant 0 : index
    %c0_30 = arith.constant 0 : index
    %44 = vector.load %arg3[%c2_28, %c0_29, %c0_30] : memref<5x1x128xf32, #tpu.memory_space<vmem>>, vector<1x1x128xf32>
    %45 = vector.shape_cast %44 : vector<1x1x128xf32> to vector<1x128xf32>
    %46 = vector.broadcast %45 : vector<1x128xf32> to vector<8x128xf32>
    %47 = arith.addf %43, %46 : vector<8x128xf32>
    %cst_31 = arith.constant 1.000000e-01 : f32
    %48 = vector.broadcast %cst_31 : f32 to vector<8x128xf32>
    %49 = arith.subf %47, %48 : vector<8x128xf32>
    %cst_32 = arith.constant 0.000000e+00 : f32
    %50 = vector.broadcast %cst_32 : f32 to vector<8x128xf32>
    %51 = arith.maximumf %49, %50 : vector<8x128xf32>
    %cst_33 = arith.constant 1.000000e-01 : f32
    %52 = vector.broadcast %cst_33 : f32 to vector<8x128xf32>
    %53 = arith.addf %47, %52 : vector<8x128xf32>
    %cst_34 = arith.constant 0.000000e+00 : f32
    %54 = vector.broadcast %cst_34 : f32 to vector<8x128xf32>
    %55 = arith.minimumf %53, %54 : vector<8x128xf32>
    %56 = arith.addf %51, %55 : vector<8x128xf32>
    %57 = arith.truncf %56 : vector<8x128xf32> to vector<8x128xbf16>
    %cst_35 = arith.constant dense<0.000000e+00> : vector<8x128xf32>
    %58 = tpu.matmul %57, %1, %cst_35 {dimension_numbers = #tpu.dot_dimension_numbers<[1], [0], [0], [1], [0, 0, 1, 1], [], []>} : vector<8x128xbf16>, vector<128x128xbf16>, vector<8x128xf32> -> vector<8x128xf32>
    %59 = arith.truncf %58 : vector<8x128xf32> to vector<8x128xbf16>
    %c3 = arith.constant 3 : index
    %c0_36 = arith.constant 0 : index
    %c0_37 = arith.constant 0 : index
    %60 = vector.load %arg2[%c3, %c0_36, %c0_37] : memref<5x128x128xbf16, #tpu.memory_space<vmem>>, vector<1x128x128xbf16>
    %61 = vector.shape_cast %60 : vector<1x128x128xbf16> to vector<128x128xbf16>
    %cst_38 = arith.constant dense<0.000000e+00> : vector<8x128xf32>
    %62 = tpu.matmul %59, %61, %cst_38 {dimension_numbers = #tpu.dot_dimension_numbers<[1], [0], [0], [1], [0, 0, 1, 1], [], []>} : vector<8x128xbf16>, vector<128x128xbf16>, vector<8x128xf32> -> vector<8x128xf32>
    %c3_39 = arith.constant 3 : index
    %c0_40 = arith.constant 0 : index
    %c0_41 = arith.constant 0 : index
    %63 = vector.load %arg3[%c3_39, %c0_40, %c0_41] : memref<5x1x128xf32, #tpu.memory_space<vmem>>, vector<1x1x128xf32>
    %64 = vector.shape_cast %63 : vector<1x1x128xf32> to vector<1x128xf32>
    %65 = vector.broadcast %64 : vector<1x128xf32> to vector<8x128xf32>
    %66 = arith.addf %62, %65 : vector<8x128xf32>
    %cst_42 = arith.constant 1.000000e-01 : f32
    %67 = vector.broadcast %cst_42 : f32 to vector<8x128xf32>
    %68 = arith.subf %66, %67 : vector<8x128xf32>
    %cst_43 = arith.constant 0.000000e+00 : f32
    %69 = vector.broadcast %cst_43 : f32 to vector<8x128xf32>
    %70 = arith.maximumf %68, %69 : vector<8x128xf32>
    %cst_44 = arith.constant 1.000000e-01 : f32
    %71 = vector.broadcast %cst_44 : f32 to vector<8x128xf32>
    %72 = arith.addf %66, %71 : vector<8x128xf32>
    %cst_45 = arith.constant 0.000000e+00 : f32
    %73 = vector.broadcast %cst_45 : f32 to vector<8x128xf32>
    %74 = arith.minimumf %72, %73 : vector<8x128xf32>
    %75 = arith.addf %70, %74 : vector<8x128xf32>
    %76 = arith.truncf %75 : vector<8x128xf32> to vector<8x128xbf16>
    %cst_46 = arith.constant dense<0.000000e+00> : vector<8x128xf32>
    %77 = tpu.matmul %76, %1, %cst_46 {dimension_numbers = #tpu.dot_dimension_numbers<[1], [0], [0], [1], [0, 0, 1, 1], [], []>} : vector<8x128xbf16>, vector<128x128xbf16>, vector<8x128xf32> -> vector<8x128xf32>
    %78 = arith.truncf %77 : vector<8x128xf32> to vector<8x128xbf16>
    %c4 = arith.constant 4 : index
    %c0_47 = arith.constant 0 : index
    %c0_48 = arith.constant 0 : index
    %79 = vector.load %arg2[%c4, %c0_47, %c0_48] : memref<5x128x128xbf16, #tpu.memory_space<vmem>>, vector<1x128x128xbf16>
    %80 = vector.shape_cast %79 : vector<1x128x128xbf16> to vector<128x128xbf16>
    %cst_49 = arith.constant dense<0.000000e+00> : vector<8x128xf32>
    %81 = tpu.matmul %78, %80, %cst_49 {dimension_numbers = #tpu.dot_dimension_numbers<[1], [0], [0], [1], [0, 0, 1, 1], [], []>} : vector<8x128xbf16>, vector<128x128xbf16>, vector<8x128xf32> -> vector<8x128xf32>
    %c4_50 = arith.constant 4 : index
    %c0_51 = arith.constant 0 : index
    %c0_52 = arith.constant 0 : index
    %82 = vector.load %arg3[%c4_50, %c0_51, %c0_52] : memref<5x1x128xf32, #tpu.memory_space<vmem>>, vector<1x1x128xf32>
    %83 = vector.shape_cast %82 : vector<1x1x128xf32> to vector<1x128xf32>
    %84 = vector.broadcast %83 : vector<1x128xf32> to vector<8x128xf32>
    %85 = arith.addf %81, %84 : vector<8x128xf32>
    %cst_53 = arith.constant 1.000000e-01 : f32
    %86 = vector.broadcast %cst_53 : f32 to vector<8x128xf32>
    %87 = arith.subf %85, %86 : vector<8x128xf32>
    %cst_54 = arith.constant 0.000000e+00 : f32
    %88 = vector.broadcast %cst_54 : f32 to vector<8x128xf32>
    %89 = arith.maximumf %87, %88 : vector<8x128xf32>
    %cst_55 = arith.constant 1.000000e-01 : f32
    %90 = vector.broadcast %cst_55 : f32 to vector<8x128xf32>
    %91 = arith.addf %85, %90 : vector<8x128xf32>
    %cst_56 = arith.constant 0.000000e+00 : f32
    %92 = vector.broadcast %cst_56 : f32 to vector<8x128xf32>
    %93 = arith.minimumf %91, %92 : vector<8x128xf32>
    %94 = arith.addf %89, %93 : vector<8x128xf32>
    %c0_57 = arith.constant 0 : index
    %c0_58 = arith.constant 0 : index
    %95 = vector.load %arg5[%c0_57, %c0_58] : memref<8x128xf32, #tpu.memory_space<vmem>>, vector<8x128xf32>
    tpu.vector_store %arg5[%c0_57, %c0_58], %94 {strides = array<i32>} : memref<8x128xf32, #tpu.memory_space<vmem>>, vector<8x128xf32>,
    return
  }
  func.func @transform_0(%arg0: i32) -> (i32, i32) {
    %c0_i32 = arith.constant 0 : i32
    %c0_i32_0 = arith.constant 0 : i32
    return %arg0, %c0_i32 : i32, i32
  }
  func.func @transform_1(%arg0: i32) -> (i32, i32, i32) {
    %c0_i32 = arith.constant 0 : i32
    %c0_i32_0 = arith.constant 0 : i32
    %c0_i32_1 = arith.constant 0 : i32
    %c0_i32_2 = arith.constant 0 : i32
    return %c0_i32, %c0_i32_0, %c0_i32_1 : i32, i32, i32
  }
  func.func @transform_2(%arg0: i32) -> (i32, i32, i32) {
    %c0_i32 = arith.constant 0 : i32
    %c0_i32_0 = arith.constant 0 : i32
    %c0_i32_1 = arith.constant 0 : i32
    %c0_i32_2 = arith.constant 0 : i32
    return %c0_i32, %c0_i32_0, %c0_i32_1 : i32, i32, i32
  }
  func.func @transform_3(%arg0: i32) -> (i32, i32) {
    %c0_i32 = arith.constant 0 : i32
    %c0_i32_0 = arith.constant 0 : i32
    %c0_i32_1 = arith.constant 0 : i32
    return %c0_i32, %c0_i32_0 : i32, i32
  }
  func.func @transform_4(%arg0: i32) -> (i32, i32) {
    %c0_i32 = arith.constant 0 : i32
    %c0_i32_0 = arith.constant 0 : i32
    return %arg0, %c0_i32 : i32, i32
  }
}

</mosaic_0001>

<bundles_post_ra>
// kernel: tpu_custom_call.1
= control target key start
LH: loop header
LB: loop body
LE: loop exit
PB: predicated region body
PF: predicated region fallthrough
CT: control target
= control target key end

     0   :  { %9 = vsyncpa [#allocation3], 0  ;;  %s1685_s0 = inlined_call_operand.hbm [shape: f32[16,128], index: 0, kind: input, shape index: {}]   ;;  %s1686_s1 = inlined_call_operand.hbm [shape: bf16[5,128,128], index: 1, kind: input, shape index: {}]   ;;  %s1687_s2 = inlined_call_operand.hbm [shape: f32[5,1,128], index: 2, kind: input, shape index: {}]   ;;  %s1688_s3 = inlined_call_operand.hbm [shape: bf16[128,128], index: 3, kind: input, shape index: {}]   ;;  %s1689_s4 = inlined_call_operand.hbm [shape: f32[16,128], index: 4, kind: output, shape index: {}]  }
   0x1   :  { %11 = vsyncpa [#allocation3 + $0x1], 0 }
   0x2   :  { %12 = vsyncpa [#allocation6], 0 }
   0x3   :  { %13 = vsyncpa [#allocation9], 0 }
   0x4   :  { %14 = vsyncpa [#allocation4], 0 }
   0x5   :  { %16 = vsyncpa [#allocation4 + $0x1], 0  ;;  %s1522_s15 = smov 0   ;;  %s1524_s16 = smov 0  }
   0x6   :  { %s1526_s17 = smov 0   ;;  %s1528_s18 = smov 0  }
   0x7 LB: > { %s153_s21 = sshll.u32 %s1686_s1, 4  ;;  %s1546_s22 = sadd.s32 4294967295, %s1488_s18   ;;  %s1488_s18 = sphi %s1528_s18, %s1700_s18   ;;  %s1484_s17 = sphi %s1526_s17, %s1699_s17   ;;  %s1480_s16 = sphi %s1524_s16, %s1698_s16   ;;  %s1476_s15 = sphi %s1522_s15, %s1697_s15   ;;  %s154_s21 = int_to_ptr.hbm [resolvable:$true] %s153_s21 }
   0x8   : > { %p946_p0 = scmp.ge.s32.totalorder %s1488_s18, 1  ;;  %p43_p1 = scmp.eq.s32.totalorder %s1546_s22, 0 }
   0x9   : > { %p142_p2 = scmp.lt.s32.totalorder %s1488_s18, 3  ;;  %s1490_s24 = smov [#allocation5]  }
   0xa   : > { %s155_s25 = sshll.u32 %s1490_s24, 4  ;;  %s167_s28 = sshll.u32 %s1687_s2, 4  ;;  %s156_s25 = int_to_ptr.vmem [resolvable:$true] %s155_s25  ;;  %s168_s28 = int_to_ptr.hbm [resolvable:$true] %s167_s28 }
   0xb   : > { %p1551_p3 = pnand %p946_p0, %p142_p2  ;;  %s1491_s30 = smov [#allocation7]  }
   0xc   : > { %s169_s5 = sshll.u32 %s1491_s30, 4  ;;  %s1492_s6 = smov 64   ;;  %s170_s5 = int_to_ptr.vmem [resolvable:$true] %s169_s5 }
   0xd   : > { %p1224_p4 = pneg %p1551_p3  ;;  %s1493_s7 = smov 4  }
   0xe   : > { %s1494_s8 = smov 16   ;;  %s1495_s9 = smov 1  }
   0xf   : > { %p1563_p6 = pnand %p1224_p4, %p43_p1  ;;  %s181_s12 = sshll.u32 %s1688_s3, 4  ;;  %s182_s12 = int_to_ptr.hbm [resolvable:$true] %s181_s12 }
  0x10   : > { %s1496_s13 = smov [#allocation8]   ;;  %s945_s19 = sadd.s32 4294967294, %s1488_s18  }
  0x11   : > { %1227 = dma.hbm_to_vmem [thread:$0]  (!%p1563_p6), %s154_s21, 5120, %s156_s25, [#allocation6], %s1492_s6, %s1492_s6, %s1493_s7  }
  0x12   : > { %1230 = dma.hbm_to_vmem [thread:$0]  (!%p1563_p6), %s168_s28, 80, %s170_s5, [#allocation6], %s1494_s8, %s1494_s8, %s1495_s9  }
  0x13   : > { %s183_s14 = sshll.u32 %s1496_s13, 4  ;;  %s1578_s20 = sadd.s32 1, %s1488_s18   ;;  %s184_s14 = int_to_ptr.vmem [resolvable:$true] %s183_s14 }
  0x14   : > { %1233 = dma.hbm_to_vmem [thread:$0]  (!%p1563_p6), %s182_s12, 1024, %s184_s14, [#allocation9], %s1492_s6, %s1492_s6, %s1493_s7  }
  0x15   : > { %s29_s21 = sadd.s32 1, %s1484_s17  ;;  %s26_s24 = ssub.s32 %s1488_s18, %s1578_s20 }
  0x16   : > { %p36_p7 = scmp.ne.s32.totalorder %s1484_s17, %s1480_s16  ;;  %p27_p8 = scmp.eq.s32.totalorder %s26_s24, 0 }
  0x17   : > { %p37_p9 = scmp.eq.s32.totalorder %s1488_s18, 0  ;;  %p42_p10 = scmp.ne.s32.totalorder %s1480_s16, %s1476_s15 }
  0x18   : > { %p129_p11 = scmp.eq.s32.totalorder %s1546_s22, 1  ;;  %p135_p0 = scmp.eq.s32.totalorder %s945_s19, 1 }
  0x19   : > { %s1590_s25 = scalar_select %p27_p8, %s1484_s17, %s29_s21  }
  0x1a   : > { %p1594_p12 = por %p43_p1, %p42_p10  ;;  %p1598_p13 = por %p129_p11, %p36_p7 }
  0x1b   : > { %p38_p2 = por %p37_p9, %p36_p7  ;;  %s197_s28 = sand.u32 1, %s1484_s17  }
  0x1c   : > { %p1603_p4 = por %p135_p0, %p42_p10  ;;  %p1245_p6 = scmp.lt.s32.totalorder %s1488_s18, 2 }
  0x1d   : > { %s951_s30 = sshll.u32 %s197_s28, 3  ;;  %s952_s5 = sshll.u32 %s1488_s18, 3 }
  0x1e   : > { %s205_s8 = scalar_lea.hbm %s1685_s0, %s952_s5  ;;  %s201_s10 = scalar_lea.vmem [#allocation2], %s951_s30 }
  0x1f   : > { %s207_s9 = sshll.u32 %s205_s8, 4  ;;  %s209_s11 = sshll.u32 %s201_s10, 4  ;;  %s208_s9 = int_to_ptr.hbm [resolvable:$true] %s207_s9  ;;  %s210_s11 = int_to_ptr.vmem [resolvable:$true] %s209_s11 }
  0x20   : > { %p1612_p8 = pnand %p1245_p6, %p38_p2  ;;  %s198_s13 = scalar_lea.sflag [#allocation3], %s197_s28 }
  0x21   : > { %s1384_s14 = sshra.s32 %s208_s9, 4  ;;  %s1391_s30 = scalar_lea.hbm %s1685_s0, 16  ;;  %s1385_s14 = int_to_ptr.hbm [resolvable:$true] %s1384_s14 }
  0x22   : > { %s1386_s19 = scalar_lea.hbm %s1385_s14, 8  ;;  %p1388_p9 = pneg %p1612_p8 }
  0x23   : > { %p1387_p7 = scmp.ne.s32.totalorder %s1385_s14, %s1386_s19  ;;  %p1392_p0 = scmp.lt.s32.totalorder %s1385_s14, %s1685_s0 }
  0x24   : > { %p1393_p2 = scmp.lt.s32.totalorder %s1391_s30, %s1386_s19 }
  0x25   : > { %p1389_p10 = pnand %p1388_p9, %p1387_p7 }
  0x26   : > { %p1394_p6 = por %p1393_p2, %p1392_p0 }
  0x27   : > { %p1390_p11 = pneg %p1389_p10 }
  0x29   : > { %p1395_p5 = pnand %p1394_p6, %p1390_p11 }
  0x2b   : > { %1398 = shalt.err (!%p1395_p5)
}
  0x2c   : > { %1237 = dma.hbm_to_vmem [thread:$0]  (!%p1612_p8), %s208_s9, 128, %s210_s11, %s198_s13  }
  0x2d   : > { %218 = sbr.rel (%p1551_p3) target bundleno = 1304 (0x518), region = 36  ;;  %s1629_s28 = sand.u32 (!%p1551_p3), 1, %s1480_s16  }
  0x2e   : > { %s954_s7 = sshll.u32 (!%p1551_p3), %s1629_s28, 3  ;;  %s221_s8 = scalar_lea.sflag (!%p1551_p3), [#allocation3], %s1629_s28 }
  0x2f   : > { %s1635_s10 = scalar_lea.vmem (!%p1551_p3), [#allocation2], %s954_s7 }
  0x32   : > { %1459 = dma.done.wait (%p1594_p12), %s221_s8, 128  }
  0x33   : > { %1461 = vsyncadd (%p1594_p12), %s221_s8, 4294967168 }
  0x34   : > { %1463 = dma.done.wait (%p43_p1), [#allocation6], 5200  }
  0x35   : > { %1465 = vsyncadd (%p43_p1), [#allocation6], 4294962096 }
  0x36   : > { %1467 = dma.done.wait (%p43_p1), [#allocation9], 1024  }
  0x37   : > { %1469 = vsyncadd (%p43_p1), [#allocation9], 4294966272  ;;  %v1175_v0 = vld [vmem:[#allocation5 + $0x38] sm:$0xff]  ;;  %v1174_v1 = vld [vmem:[#allocation5 + $0x30] sm:$0xff]  ;;  %s1157_s23 = sshll.u32 %s1546_s22, 3  ;;  %s264_s12 = scalar_lea.vmem [#allocation10], %s954_s7 }
  0x38   : > { %351 = vmatpush.bf16.msra.mxu0 %v1175_v0  ;;  %v1167_v2 = vld [vmem:[#allocation8 + $0x38] sm:$0xff]  ;;  %v1166_v3 = vld [vmem:[#allocation8 + $0x30] sm:$0xff]  ;;  %v1173_v4 = vld [vmem:[#allocation5 + $0x28] sm:$0xff]  ;;  %s841_s11 = scalar_lea.hbm %s1689_s4, %s1157_s23  ;;  %s843_s13 = sshll.u32 %s264_s12, 4  ;;  %s844_s13 = int_to_ptr.vmem [resolvable:$true] %s843_s13 }
  0x39   : > { %418 = vmatpush.bf16.msra.mxu1 %v1167_v2  ;;  %521 = vmatpush.bf16.msra.mxu3 %v1167_v2  ;;  %v1165_v5 = vld [vmem:[#allocation8 + $0x28] sm:$0xff]  ;;  %v1172_v6 = vld [vmem:[#allocation5 + $0x20] sm:$0xff]  ;;  %v1171_v8 = vld [vmem:[#allocation5 + $0x18] sm:$0xff]  ;;  %s845_s14 = sshll.u32 %s841_s11, 4  ;;  %s831_s22 = scalar_lea.sflag [#allocation4], %s1629_s28  ;;  %s846_s14 = int_to_ptr.hbm [resolvable:$true] %s845_s14 }
  0x3a   : > { %v1164_v7 = vld [vmem:[#allocation8 + $0x20] sm:$0xff]  ;;  %v1163_v9 = vld [vmem:[#allocation8 + $0x18] sm:$0xff]  ;;  %v1170_v10 = vld [vmem:[#allocation5 + $0x10] sm:$0xff]  ;;  %s1428_s19 = sshra.s32 %s846_s14, 4  ;;  %s1434_s5 = scalar_lea.hbm %s1689_s4, 16  ;;  %s1429_s19 = int_to_ptr.hbm [resolvable:$true] %s1428_s19 }
  0x3b   : > { %v1169_v11 = vld [vmem:[#allocation5 + $0x8] sm:$0xff]  ;;  %v1168_v12 = vld [vmem:[#allocation5] sm:$0xff]  ;;  %v265_v13 = vld [vmem:[%s1635_s10] sm:$0xff]  ;;  %s1430_s21 = scalar_lea.hbm %s1429_s19, 8  ;;  %p1435_p12 = scmp.lt.s32.totalorder %s1429_s19, %s1689_s4 }
  0x3c   : > { %352 = vmatpush.bf16.msra.mxu0 %v1174_v1  ;;  %v282_v14 = vpack.c.bf16 %v265_v13, %v265_v13  ;;  %v1162_v15 = vld [vmem:[#allocation8 + $0x10] sm:$0xff]  ;;  %v1161_v16 = vld [vmem:[#allocation8 + $0x8] sm:$0xff]  ;;  %v1160_v17 = vld [vmem:[#allocation8] sm:$0xff]  ;;  %p1431_p1 = scmp.ne.s32.totalorder %s1429_s19, %s1430_s21  ;;  %p1436_p8 = scmp.lt.s32.totalorder %s1434_s5, %s1430_s21 }
  0x3d   : > { %419 = vmatpush.bf16.msra.mxu1 %v1166_v3  ;;  %522 = vmatpush.bf16.msra.mxu3 %v1166_v3  ;;  %v1183_v18 = vld [vmem:[#allocation5 + $0x78] sm:$0xff]  ;;  %v1182_v19 = vld [vmem:[#allocation5 + $0x70] sm:$0xff]  ;;  %v1181_v20 = vld [vmem:[#allocation5 + $0x68] sm:$0xff] }
  0x3e   : > { %502 = vmatpush.bf16.msra.mxu2 %v1183_v18  ;;  %v1180_v21 = vld [vmem:[#allocation5 + $0x60] sm:$0xff]  ;;  %v1179_v22 = vld [vmem:[#allocation5 + $0x58] sm:$0xff]  ;;  %v1178_v24 = vld [vmem:[#allocation5 + $0x50] sm:$0xff]  ;;  %p1432_p3 = pnand %p1431_p1, %p1598_p13  ;;  %p1437_p7 = por %p1436_p8, %p1435_p12 }
  0x3f   : > { %v1289_v23 = vld [vmem:[#allocation7] ss:$0 sm:$0xff]  ;;  %v1177_v27 = vld [vmem:[#allocation5 + $0x48] sm:$0xff]  ;;  %v1191_v39 = vld [vmem:[#allocation5 + $0xb8] sm:$0xff] }
  0x40   : > { %353 = vmatpush.bf16.msra.mxu0 %v1173_v4  ;;  %v1176_v35 = vld [vmem:[#allocation5 + $0x40] sm:$0xff]  ;;  %v1190_v40 = vld [vmem:[#allocation5 + $0xb0] sm:$0xff]  ;;  %v1189_v41 = vld [vmem:[#allocation5 + $0xa8] sm:$0xff]  ;;  %p1433_p5 = pneg %p1432_p3 }
  0x41   : > { %420 = vmatpush.bf16.msra.mxu1 %v1165_v5  ;;  %523 = vmatpush.bf16.msra.mxu3 %v1165_v5  ;;  %v1188_v42 = vld [vmem:[#allocation5 + $0xa0] sm:$0xff]  ;;  %v1187_v43 = vld [vmem:[#allocation5 + $0x98] sm:$0xff]  ;;  %v1186_v45 = vld [vmem:[#allocation5 + $0x90] sm:$0xff] }
  0x42   : > { %503 = vmatpush.bf16.msra.mxu2 %v1182_v19  ;;  %v1290_v44 = vld [vmem:[#allocation7 + $0x1] ss:$0 sm:$0xff]  ;;  %v1185_v48 = vld [vmem:[#allocation5 + $0x88] sm:$0xff]  ;;  %v1199_v60 = vld [vmem:[#allocation5 + $0xf8] sm:$0xff]  ;;  %p1438_p9 = pnand %p1437_p7, %p1433_p5 }
  0x43   : > { %v1184_v56 = vld [vmem:[#allocation5 + $0x80] sm:$0xff]  ;;  %v1198_v61 = vld [vmem:[#allocation5 + $0xf0] sm:$0xff]  ;;  %v1197_v62 = vld [vmem:[#allocation5 + $0xe8] sm:$0xff] }
  0x44   : > { %354 = vmatpush.bf16.msra.mxu0 %v1172_v6  ;;  %v1196_v63 = vld [vmem:[#allocation5 + $0xe0] sm:$0xff]  ;;  %v1195_v0 = vld [vmem:[#allocation5 + $0xd8] sm:$0xff]  ;;  %v1206_v18 = vld [vmem:[#allocation5 + $0x130] sm:$0xff] }
  0x45   : > { %421 = vmatpush.bf16.msra.mxu1 %v1164_v7  ;;  %524 = vmatpush.bf16.msra.mxu3 %v1164_v7  ;;  %v1291_v1 = vld [vmem:[#allocation7 + $0x2] ss:$0 sm:$0xff]  ;;  %v1205_v19 = vld [vmem:[#allocation5 + $0x128] sm:$0xff] }
  0x46   : > { %504 = vmatpush.bf16.msra.mxu2 %v1181_v20  ;;  %v1192_v13 = vld [vmem:[#allocation5 + $0xc0] sm:$0xff] }
  0x47   : > { %v1204_v20 = vld [vmem:[#allocation5 + $0x120] sm:$0xff] }
  0x48   : > { %355 = vmatpush.bf16.msra.mxu0 %v1171_v8 }
  0x49   : > { %422 = vmatpush.bf16.msra.mxu1 %v1163_v9  ;;  %525 = vmatpush.bf16.msra.mxu3 %v1163_v9 }
  0x4a   : > { %505 = vmatpush.bf16.msra.mxu2 %v1180_v21  ;;  %v1203_v21 = vld [vmem:[#allocation5 + $0x118] sm:$0xff] }
  0x4c   : > { %356 = vmatpush.bf16.msra.mxu0 %v1170_v10 }
  0x4d   : > { %423 = vmatpush.bf16.msra.mxu1 %v1162_v15  ;;  %526 = vmatpush.bf16.msra.mxu3 %v1162_v15 }
  0x4e   : > { %506 = vmatpush.bf16.msra.mxu2 %v1179_v22  ;;  %v1292_v22 = vld [vmem:[#allocation7 + $0x3] ss:$0 sm:$0xff] }
  0x50   : > { %357 = vmatpush.bf16.msra.mxu0 %v1169_v11 }
  0x51   : > { %424 = vmatpush.bf16.msra.mxu1 %v1161_v16  ;;  %527 = vmatpush.bf16.msra.mxu3 %v1161_v16 }
  0x52   : > { %507 = vmatpush.bf16.msra.mxu2 %v1178_v24 }
  0x54   : > { %358 = vmatpush.bf16.msra.mxu0 %v1168_v12 }
  0x55   : > { %425 = vmatpush.bf16.msra.mxu1 %v1160_v17  ;;  %528 = vmatpush.bf16.msra.mxu3 %v1160_v17 }
  0x56   : > { %508 = vmatpush.bf16.msra.mxu2 %v1177_v27 }
  0x57   : > { %359 = vmatmul.bf16.vlgmr.msra.gmra.mxu0 %v282_v14 }
  0x58   : > { %605 = vmatpush.bf16.msrb.mxu0 %v1191_v39 }
  0x59   : > { %624 = vmatpush.bf16.msrb.mxu1 %v1167_v2  ;;  %727 = vmatpush.bf16.msrb.mxu3 %v1167_v2  ;;  %v1194_v2 = vld [vmem:[#allocation5 + $0xd0] sm:$0xff] }
  0x5a   : > { %509 = vmatpush.bf16.msra.mxu2 %v1176_v35 }
  0x5c   : > { %606 = vmatpush.bf16.msrb.mxu0 %v1190_v40 }
  0x5d   : > { %625 = vmatpush.bf16.msrb.mxu1 %v1166_v3  ;;  %728 = vmatpush.bf16.msrb.mxu3 %v1166_v3 }
  0x5e   : > { %708 = vmatpush.bf16.msrb.mxu2 %v1199_v60 }
  0x60   : > { %607 = vmatpush.bf16.msrb.mxu0 %v1189_v41 }
  0x61   : > { %626 = vmatpush.bf16.msrb.mxu1 %v1165_v5  ;;  %729 = vmatpush.bf16.msrb.mxu3 %v1165_v5  ;;  %v1193_v5 = vld [vmem:[#allocation5 + $0xc8] sm:$0xff] }
  0x62   : > { %709 = vmatpush.bf16.msrb.mxu2 %v1198_v61 }
  0x64   : > { %608 = vmatpush.bf16.msrb.mxu0 %v1188_v42 }
  0x65   : > { %627 = vmatpush.bf16.msrb.mxu1 %v1164_v7  ;;  %730 = vmatpush.bf16.msrb.mxu3 %v1164_v7 }
  0x66   : > { %710 = vmatpush.bf16.msrb.mxu2 %v1197_v62 }
  0x68   : > { %609 = vmatpush.bf16.msrb.mxu0 %v1187_v43 }
  0x69   : > { %628 = vmatpush.bf16.msrb.mxu1 %v1163_v9  ;;  %731 = vmatpush.bf16.msrb.mxu3 %v1163_v9 }
  0x6a   : > { %711 = vmatpush.bf16.msrb.mxu2 %v1196_v63 }
  0x6c   : > { %610 = vmatpush.bf16.msrb.mxu0 %v1186_v45 }
  0x6d   : > { %629 = vmatpush.bf16.msrb.mxu1 %v1162_v15  ;;  %732 = vmatpush.bf16.msrb.mxu3 %v1162_v15 }
  0x6e   : > { %712 = vmatpush.bf16.msrb.mxu2 %v1195_v0 }
  0x70   : > { %611 = vmatpush.bf16.msrb.mxu0 %v1185_v48 }
  0x71   : > { %630 = vmatpush.bf16.msrb.mxu1 %v1161_v16  ;;  %733 = vmatpush.bf16.msrb.mxu3 %v1161_v16 }
  0x72   : > { %713 = vmatpush.bf16.msrb.mxu2 %v1194_v2 }
  0x74   : > { %612 = vmatpush.bf16.msrb.mxu0 %v1184_v56 }
  0x75   : > { %631 = vmatpush.bf16.msrb.mxu1 %v1160_v17  ;;  %734 = vmatpush.bf16.msrb.mxu3 %v1160_v17  ;;  %v1207_v17 = vld [vmem:[#allocation5 + $0x138] sm:$0xff] }
  0x76   : > { %714 = vmatpush.bf16.msrb.mxu2 %v1193_v5 }
  0x78   : > { %811 = vmatpush.bf16.msra.mxu0 %v1207_v17 }
  0x7a   : > { %715 = vmatpush.bf16.msrb.mxu2 %v1192_v13 }
  0x7c   : > { %812 = vmatpush.bf16.msra.mxu0 %v1206_v18 }
  0x80   : > { %813 = vmatpush.bf16.msra.mxu0 %v1205_v19 }
  0x84   : > { %814 = vmatpush.bf16.msra.mxu0 %v1204_v20 }
  0x88   : > { %815 = vmatpush.bf16.msra.mxu0 %v1203_v21 }
  0xd4   : > { %v360_v25 = vpop.f32.mrf.mxu0 }
  0xd5   : > { %v361_v26 = vadd.f32 %v1289_v23, %v360_v25  ;;  %v1202_v23 = vld [vmem:[#allocation5 + $0x110] sm:$0xff] }
  0xd6   : > { %816 = vmatpush.bf16.msra.mxu0 %v1202_v23 }
  0xd7   : > { %v991_v28 = vadd.f32 -0.1, %v361_v26  ;;  %v366_v29 = vadd.f32 0.1, %v361_v26  ;;  %v1201_v26 = vld [vmem:[#allocation5 + $0x108] sm:$0xff] }
  0xd9   : > { %v365_v30 = vmax.f32 %v991_v28, 0.0  ;;  %v367_v31 = vmin.f32 %v366_v29, 0.0 }
  0xda   : > { %817 = vmatpush.bf16.msra.mxu0 %v1201_v26 }
  0xdb   : > { %v368_v32 = vadd.f32 %v367_v31, %v365_v30 }
  0xdc   : > { %v362_v33 = vpop.f32.mrf.mxu0 }
  0xdd   : > { %v369_v34 = vpack.c.bf16 %v368_v32, %v368_v32 }
  0xdf   : > { %426 = vmatmul.bf16.vlgmr.msra.gmra.mxu1 %v369_v34  ;;  %v1200_v34 = vld [vmem:[#allocation5 + $0x100] sm:$0xff] }
  0xe0   : > { %818 = vmatpush.bf16.msra.mxu0 %v1200_v34 }
 0x15c   : > { %v427_v36 = vpop.f32.mrf.mxu1 }
 0x15d   : > { %v431_v37 = vpack.c.bf16 %v427_v36, %v427_v36 }
 0x15f   : > { %510 = vmatmul.bf16.vlgmr.msra.gmra.mxu2 %v431_v37 }
 0x164   : > { %v429_v38 = vpop.f32.mrf.mxu1 }
 0x165   : > { %v1293_v38 = vld [vmem:[#allocation7 + $0x4] ss:$0 sm:$0xff] }
 0x1e2   : > { %v511_v46 = vpop.f32.mrf.mxu2 }
 0x1e3   : > { %v512_v47 = vadd.f32 %v1290_v44, %v511_v46 }
 0x1e5   : > { %v1056_v49 = vadd.f32 -0.1, %v512_v47  ;;  %v517_v50 = vadd.f32 0.1, %v512_v47 }
 0x1e7   : > { %v516_v51 = vmax.f32 %v1056_v49, 0.0  ;;  %v518_v52 = vmin.f32 %v517_v50, 0.0 }
 0x1e9   : > { %v519_v53 = vadd.f32 %v518_v52, %v516_v51 }
 0x1ea   : > { %v513_v54 = vpop.f32.mrf.mxu2 }
 0x1eb   : > { %v520_v55 = vpack.c.bf16 %v519_v53, %v519_v53 }
 0x1ed   : > { %529 = vmatmul.bf16.vlgmr.msra.gmra.mxu3 %v520_v55 }
 0x270   : > { %v530_v57 = vpop.f32.mrf.mxu3 }
 0x271   : > { %v534_v58 = vpack.c.bf16 %v530_v57, %v530_v57 }
 0x273   : > { %613 = vmatmul.bf16.vlgmr.msrb.gmra.mxu0 %v534_v58 }
 0x278   : > { %v532_v59 = vpop.f32.mrf.mxu3 }
 0x2f0   : > { %v614_v3 = vpop.f32.mrf.mxu0 }
 0x2f1   : > { %v615_v4 = vadd.f32 %v1291_v1, %v614_v3 }
 0x2f3   : > { %v1089_v6 = vadd.f32 -0.1, %v615_v4  ;;  %v620_v7 = vadd.f32 0.1, %v615_v4 }
 0x2f5   : > { %v619_v8 = vmax.f32 %v1089_v6, 0.0  ;;  %v621_v9 = vmin.f32 %v620_v7, 0.0 }
 0x2f7   : > { %v622_v10 = vadd.f32 %v621_v9, %v619_v8 }
 0x2f8   : > { %v616_v11 = vpop.f32.mrf.mxu0 }
 0x2f9   : > { %v623_v12 = vpack.c.bf16 %v622_v10, %v622_v10 }
 0x2fb   : > { %632 = vmatmul.bf16.vlgmr.msrb.gmra.mxu1 %v623_v12 }
 0x378   : > { %v633_v14 = vpop.f32.mrf.mxu1 }
 0x379   : > { %v637_v15 = vpack.c.bf16 %v633_v14, %v633_v14 }
 0x37b   : > { %716 = vmatmul.bf16.vlgmr.msrb.gmra.mxu2 %v637_v15 }
 0x380   : > { %v635_v16 = vpop.f32.mrf.mxu1 }
 0x3fe   : > { %v717_v24 = vpop.f32.mrf.mxu2 }
 0x3ff   : > { %v718_v25 = vadd.f32 %v1292_v22, %v717_v24 }
 0x401   : > { %v1122_v27 = vadd.f32 -0.1, %v718_v25  ;;  %v723_v28 = vadd.f32 0.1, %v718_v25 }
 0x403   : > { %v722_v29 = vmax.f32 %v1122_v27, 0.0  ;;  %v724_v30 = vmin.f32 %v723_v28, 0.0 }
 0x405   : > { %v725_v31 = vadd.f32 %v724_v30, %v722_v29 }
 0x406   : > { %v719_v32 = vpop.f32.mrf.mxu2 }
 0x407   : > { %v726_v33 = vpack.c.bf16 %v725_v31, %v725_v31 }
 0x409   : > { %735 = vmatmul.bf16.vlgmr.msrb.gmra.mxu3 %v726_v33 }
 0x48c   : > { %v736_v35 = vpop.f32.mrf.mxu3 }
 0x48d   : > { %v740_v36 = vpack.c.bf16 %v736_v35, %v736_v35 }
 0x48f   : > { %819 = vmatmul.bf16.vlgmr.msra.gmra.mxu0 %v740_v36 }
 0x494   : > { %v738_v37 = vpop.f32.mrf.mxu3 }
 0x50c   : > { %v820_v39 = vpop.f32.mrf.mxu0 }
 0x50d   : > { %v821_v40 = vadd.f32 %v1293_v38, %v820_v39 }
 0x50f   : > { %v1155_v41 = vadd.f32 -0.1, %v821_v40  ;;  %v826_v42 = vadd.f32 0.1, %v821_v40 }
 0x511   : > { %v825_v43 = vmax.f32 %v1155_v41, 0.0  ;;  %v827_v44 = vmin.f32 %v826_v42, 0.0 }
 0x513   : > { %v828_v45 = vadd.f32 %v827_v44, %v825_v43 }
 0x514   : > { %v822_v46 = vpop.f32.mrf.mxu0 }
 0x515   : > { %829 = vst [vmem:[%s264_s12] sm:$0xff] %v828_v45 }
 0x516   : > { %1441 = shalt.err (!%p1438_p9)
}
 0x517   : > { %1222 = dma.vmem_to_hbm [thread:$0]  (%p1598_p13), %s844_s13, 128, %s846_s14, %s831_s22  }
 0x518 PF: > { %s857_s28 = sand.u32 1, %s1476_s15   ;;  %p1696_p10 = scmp.ge.s32.totalorder %s1488_s18, 2 }
 0x519   : > { %s858_s8 = scalar_lea.sflag [#allocation4], %s857_s28 }
 0x51a   : > { %p1239_p11 = pnand %p1696_p10, %p1603_p4 }
 0x51c   : > { %p1240_p0 = pneg %p1239_p11 }
 0x51e   : > { %1471 = dma.done.wait (%p1240_p0), %s858_s8, 128  }
 0x51f   : > { %1473 = vsyncadd (%p1240_p0), %s858_s8, 4294967168  ;;  %p19_p2 = scmp.ge.s32.totalorder %s1578_s20, 4   ;;  %s1697_s15 = smov %s1480_s16 }
 0x520   : > { %s1698_s16 = smov %s1484_s17  ;;  %s1699_s17 = smov %s1590_s25 }
 0x521   : > { %s1700_s18 = smov %s1578_s20  ;;  %21 = sbr.rel (!%p19_p2) target bundleno = 7 (0x7), region = 101 }
 0x526   :  { %864 = vsyncpa [#allocation3], 1 }
 0x527   :  { %866 = vsyncpa [#allocation3 + $0x1], 1 }
 0x528   :  { %867 = vsyncpa [#allocation6], 1 }
 0x529   :  { %868 = vsyncpa [#allocation9], 1 }
 0x52a   :  { %869 = vsyncpa [#allocation4], 1 }
 0x52b   :  { %871 = vsyncpa [#allocation4 + $0x1], 1 }

// kernel: tpu_custom_call.1
= control target key start
LH: loop header
LB: loop body
LE: loop exit
PB: predicated region body
PF: predicated region fallthrough
CT: control target
= control target key end

     0   :  { %9 = vsyncpa [#allocation3], 0  ;;  %s1685_s0 = inlined_call_operand.hbm [shape: f32[16,128], index: 0, kind: input, shape index: {}]   ;;  %s1686_s1 = inlined_call_operand.hbm [shape: bf16[5,128,128], index: 1, kind: input, shape index: {}]   ;;  %s1687_s2 = inlined_call_operand.hbm [shape: f32[5,1,128], index: 2, kind: input, shape index: {}]   ;;  %s1688_s3 = inlined_call_operand.hbm [shape: bf16[128,128], index: 3, kind: input, shape index: {}]   ;;  %s1689_s4 = inlined_call_operand.hbm [shape: f32[16,128], index: 4, kind: output, shape index: {}]  }
   0x1   :  { %11 = vsyncpa [#allocation3 + $0x1], 0 }
   0x2   :  { %12 = vsyncpa [#allocation6], 0 }
   0x3   :  { %13 = vsyncpa [#allocation9], 0 }
   0x4   :  { %14 = vsyncpa [#allocation4], 0 }
   0x5   :  { %16 = vsyncpa [#allocation4 + $0x1], 0  ;;  %s1522_s15 = smov 0   ;;  %s1524_s16 = smov 0  }
   0x6   :  { %s1526_s17 = smov 0   ;;  %s1528_s18 = smov 0  }
   0x7 LB: > { %s153_s21 = sshll.u32 %s1686_s1, 4  ;;  %s1546_s22 = sadd.s32 4294967295, %s1488_s18   ;;  %s1488_s18 = sphi %s1528_s18, %s1700_s18   ;;  %s1484_s17 = sphi %s1526_s17, %s1699_s17   ;;  %s1480_s16 = sphi %s1524_s16, %s1698_s16   ;;  %s1476_s15 = sphi %s1522_s15, %s1697_s15   ;;  %s154_s21 = int_to_ptr.hbm [resolvable:$true] %s153_s21 }
   0x8   : > { %p946_p0 = scmp.ge.s32.totalorder %s1488_s18, 1  ;;  %p43_p1 = scmp.eq.s32.totalorder %s1546_s22, 0 }
   0x9   : > { %p142_p2 = scmp.lt.s32.totalorder %s1488_s18, 3  ;;  %s1490_s24 = smov [#allocation5]  }
   0xa   : > { %s155_s25 = sshll.u32 %s1490_s24, 4  ;;  %s167_s28 = sshll.u32 %s1687_s2, 4  ;;  %s156_s25 = int_to_ptr.vmem [resolvable:$true] %s155_s25  ;;  %s168_s28 = int_to_ptr.hbm [resolvable:$true] %s167_s28 }
   0xb   : > { %p1551_p3 = pnand %p946_p0, %p142_p2  ;;  %s1491_s30 = smov [#allocation7]  }
   0xc   : > { %s169_s5 = sshll.u32 %s1491_s30, 4  ;;  %s1492_s6 = smov 64   ;;  %s170_s5 = int_to_ptr.vmem [resolvable:$true] %s169_s5 }
   0xd   : > { %p1224_p4 = pneg %p1551_p3  ;;  %s1493_s7 = smov 4  }
   0xe   : > { %s1494_s8 = smov 16   ;;  %s1495_s9 = smov 1  }
   0xf   : > { %p1563_p6 = pnand %p1224_p4, %p43_p1  ;;  %s181_s12 = sshll.u32 %s1688_s3, 4  ;;  %s182_s12 = int_to_ptr.hbm [resolvable:$true] %s181_s12 }
  0x10   : > { %s1496_s13 = smov [#allocation8]   ;;  %s945_s19 = sadd.s32 4294967294, %s1488_s18  }
  0x11   : > { %1227 = dma.hbm_to_vmem [thread:$0]  (!%p1563_p6), %s154_s21, 5120, %s156_s25, [#allocation6], %s1492_s6, %s1492_s6, %s1493_s7  }
  0x12   : > { %1230 = dma.hbm_to_vmem [thread:$0]  (!%p1563_p6), %s168_s28, 80, %s170_s5, [#allocation6], %s1494_s8, %s1494_s8, %s1495_s9  }
  0x13   : > { %s183_s14 = sshll.u32 %s1496_s13, 4  ;;  %s1578_s20 = sadd.s32 1, %s1488_s18   ;;  %s184_s14 = int_to_ptr.vmem [resolvable:$true] %s183_s14 }
  0x14   : > { %1233 = dma.hbm_to_vmem [thread:$0]  (!%p1563_p6), %s182_s12, 1024, %s184_s14, [#allocation9], %s1492_s6, %s1492_s6, %s1493_s7  }
  0x15   : > { %s29_s21 = sadd.s32 1, %s1484_s17  ;;  %s26_s24 = ssub.s32 %s1488_s18, %s1578_s20 }
  0x16   : > { %p36_p7 = scmp.ne.s32.totalorder %s1484_s17, %s1480_s16  ;;  %p27_p8 = scmp.eq.s32.totalorder %s26_s24, 0 }
  0x17   : > { %p37_p9 = scmp.eq.s32.totalorder %s1488_s18, 0  ;;  %p42_p10 = scmp.ne.s32.totalorder %s1480_s16, %s1476_s15 }
  0x18   : > { %p129_p11 = scmp.eq.s32.totalorder %s1546_s22, 1  ;;  %p135_p0 = scmp.eq.s32.totalorder %s945_s19, 1 }
  0x19   : > { %s1590_s25 = scalar_select %p27_p8, %s1484_s17, %s29_s21  }
  0x1a   : > { %p1594_p12 = por %p43_p1, %p42_p10  ;;  %p1598_p13 = por %p129_p11, %p36_p7 }
  0x1b   : > { %p38_p2 = por %p37_p9, %p36_p7  ;;  %s197_s28 = sand.u32 1, %s1484_s17  }
  0x1c   : > { %p1603_p4 = por %p135_p0, %p42_p10  ;;  %p1245_p6 = scmp.lt.s32.totalorder %s1488_s18, 2 }
  0x1d   : > { %s951_s30 = sshll.u32 %s197_s28, 3  ;;  %s952_s5 = sshll.u32 %s1488_s18, 3 }
  0x1e   : > { %s205_s8 = scalar_lea.hbm %s1685_s0, %s952_s5  ;;  %s201_s10 = scalar_lea.vmem [#allocation2], %s951_s30 }
  0x1f   : > { %s207_s9 = sshll.u32 %s205_s8, 4  ;;  %s209_s11 = sshll.u32 %s201_s10, 4  ;;  %s208_s9 = int_to_ptr.hbm [resolvable:$true] %s207_s9  ;;  %s210_s11 = int_to_ptr.vmem [resolvable:$true] %s209_s11 }
  0x20   : > { %p1612_p8 = pnand %p1245_p6, %p38_p2  ;;  %s198_s13 = scalar_lea.sflag [#allocation3], %s197_s28 }
  0x21   : > { %s1384_s14 = sshra.s32 %s208_s9, 4  ;;  %s1391_s30 = scalar_lea.hbm %s1685_s0, 16  ;;  %s1385_s14 = int_to_ptr.hbm [resolvable:$true] %s1384_s14 }
  0x22   : > { %s1386_s19 = scalar_lea.hbm %s1385_s14, 8  ;;  %p1388_p9 = pneg %p1612_p8 }
  0x23   : > { %p1387_p7 = scmp.ne.s32.totalorder %s1385_s14, %s1386_s19  ;;  %p1392_p0 = scmp.lt.s32.totalorder %s1385_s14, %s1685_s0 }
  0x24   : > { %p1393_p2 = scmp.lt.s32.totalorder %s1391_s30, %s1386_s19 }
  0x25   : > { %p1389_p10 = pnand %p1388_p9, %p1387_p7 }
  0x26   : > { %p1394_p6 = por %p1393_p2, %p1392_p0 }
  0x27   : > { %p1390_p11 = pneg %p1389_p10 }
  0x29   : > { %p1395_p5 = pnand %p1394_p6, %p1390_p11 }
  0x2b   : > { %1398 = shalt.err (!%p1395_p5)
}
  0x2c   : > { %1237 = dma.hbm_to_vmem [thread:$0]  (!%p1612_p8), %s208_s9, 128, %s210_s11, %s198_s13  }
  0x2d   : > { %218 = sbr.rel (%p1551_p3) target bundleno = 1304 (0x518), region = 36  ;;  %s1629_s28 = sand.u32 (!%p1551_p3), 1, %s1480_s16  }
  0x2e   : > { %s954_s7 = sshll.u32 (!%p1551_p3), %s1629_s28, 3  ;;  %s221_s8 = scalar_lea.sflag (!%p1551_p3), [#allocation3], %s1629_s28 }
  0x2f   : > { %s1635_s10 = scalar_lea.vmem (!%p1551_p3), [#allocation2], %s954_s7 }
  0x32   : > { %1459 = dma.done.wait (%p1594_p12), %s221_s8, 128  }
  0x33   : > { %1461 = vsyncadd (%p1594_p12), %s221_s8, 4294967168 }
  0x34   : > { %1463 = dma.done.wait (%p43_p1), [#allocation6], 5200  }
  0x35   : > { %1465 = vsyncadd (%p43_p1), [#allocation6], 4294962096 }
  0x36   : > { %1467 = dma.done.wait (%p43_p1), [#allocation9], 1024  }
  0x37   : > { %1469 = vsyncadd (%p43_p1), [#allocation9], 4294966272  ;;  %v1175_v0 = vld [vmem:[#allocation5 + $0x38] sm:$0xff]  ;;  %v1174_v1 = vld [vmem:[#allocation5 + $0x30] sm:$0xff]  ;;  %s1157_s23 = sshll.u32 %s1546_s22, 3  ;;  %s264_s12 = scalar_lea.vmem [#allocation10], %s954_s7 }
  0x38   : > { %351 = vmatpush.bf16.msra.mxu0 %v1175_v0  ;;  %v1167_v2 = vld [vmem:[#allocation8 + $0x38] sm:$0xff]  ;;  %v1166_v3 = vld [vmem:[#allocation8 + $0x30] sm:$0xff]  ;;  %v1173_v4 = vld [vmem:[#allocation5 + $0x28] sm:$0xff]  ;;  %s841_s11 = scalar_lea.hbm %s1689_s4, %s1157_s23  ;;  %s843_s13 = sshll.u32 %s264_s12, 4  ;;  %s844_s13 = int_to_ptr.vmem [resolvable:$true] %s843_s13 }
  0x39   : > { %418 = vmatpush.bf16.msra.mxu1 %v1167_v2  ;;  %521 = vmatpush.bf16.msra.mxu3 %v1167_v2  ;;  %v1165_v5 = vld [vmem:[#allocation8 + $0x28] sm:$0xff]  ;;  %v1172_v6 = vld [vmem:[#allocation5 + $0x20] sm:$0xff]  ;;  %v1171_v8 = vld [vmem:[#allocation5 + $0x18] sm:$0xff]  ;;  %s845_s14 = sshll.u32 %s841_s11, 4  ;;  %s831_s22 = scalar_lea.sflag [#allocation4], %s1629_s28  ;;  %s846_s14 = int_to_ptr.hbm [resolvable:$true] %s845_s14 }
  0x3a   : > { %v1164_v7 = vld [vmem:[#allocation8 + $0x20] sm:$0xff]  ;;  %v1163_v9 = vld [vmem:[#allocation8 + $0x18] sm:$0xff]  ;;  %v1170_v10 = vld [vmem:[#allocation5 + $0x10] sm:$0xff]  ;;  %s1428_s19 = sshra.s32 %s846_s14, 4  ;;  %s1434_s5 = scalar_lea.hbm %s1689_s4, 16  ;;  %s1429_s19 = int_to_ptr.hbm [resolvable:$true] %s1428_s19 }
  0x3b   : > { %v1169_v11 = vld [vmem:[#allocation5 + $0x8] sm:$0xff]  ;;  %v1168_v12 = vld [vmem:[#allocation5] sm:$0xff]  ;;  %v265_v13 = vld [vmem:[%s1635_s10] sm:$0xff]  ;;  %s1430_s21 = scalar_lea.hbm %s1429_s19, 8  ;;  %p1435_p12 = scmp.lt.s32.totalorder %s1429_s19, %s1689_s4 }
  0x3c   : > { %352 = vmatpush.bf16.msra.mxu0 %v1174_v1  ;;  %v282_v14 = vpack.c.bf16 %v265_v13, %v265_v13  ;;  %v1162_v15 = vld [vmem:[#allocation8 + $0x10] sm:$0xff]  ;;  %v1161_v16 = vld [vmem:[#allocation8 + $0x8] sm:$0xff]  ;;  %v1160_v17 = vld [vmem:[#allocation8] sm:$0xff]  ;;  %p1431_p1 = scmp.ne.s32.totalorder %s1429_s19, %s1430_s21  ;;  %p1436_p8 = scmp.lt.s32.totalorder %s1434_s5, %s1430_s21 }
  0x3d   : > { %419 = vmatpush.bf16.msra.mxu1 %v1166_v3  ;;  %522 = vmatpush.bf16.msra.mxu3 %v1166_v3  ;;  %v1183_v18 = vld [vmem:[#allocation5 + $0x78] sm:$0xff]  ;;  %v1182_v19 = vld [vmem:[#allocation5 + $0x70] sm:$0xff]  ;;  %v1181_v20 = vld [vmem:[#allocation5 + $0x68] sm:$0xff] }
  0x3e   : > { %502 = vmatpush.bf16.msra.mxu2 %v1183_v18  ;;  %v1180_v21 = vld [vmem:[#allocation5 + $0x60] sm:$0xff]  ;;  %v1179_v22 = vld [vmem:[#allocation5 + $0x58] sm:$0xff]  ;;  %v1178_v24 = vld [vmem:[#allocation5 + $0x50] sm:$0xff]  ;;  %p1432_p3 = pnand %p1431_p1, %p1598_p13  ;;  %p1437_p7 = por %p1436_p8, %p1435_p12 }
  0x3f   : > { %v1289_v23 = vld [vmem:[#allocation7] ss:$0 sm:$0xff]  ;;  %v1177_v27 = vld [vmem:[#allocation5 + $0x48] sm:$0xff]  ;;  %v1191_v39 = vld [vmem:[#allocation5 + $0xb8] sm:$0xff] }
  0x40   : > { %353 = vmatpush.bf16.msra.mxu0 %v1173_v4  ;;  %v1176_v35 = vld [vmem:[#allocation5 + $0x40] sm:$0xff]  ;;  %v1190_v40 = vld [vmem:[#allocation5 + $0xb0] sm:$0xff]  ;;  %v1189_v41 = vld [vmem:[#allocation5 + $0xa8] sm:$0xff]  ;;  %p1433_p5 = pneg %p1432_p3 }
  0x41   : > { %420 = vmatpush.bf16.msra.mxu1 %v1165_v5  ;;  %523 = vmatpush.bf16.msra.mxu3 %v1165_v5  ;;  %v1188_v42 = vld [vmem:[#allocation5 + $0xa0] sm:$0xff]  ;;  %v1187_v43 = vld [vmem:[#allocation5 + $0x98] sm:$0xff]  ;;  %v1186_v45 = vld [vmem:[#allocation5 + $0x90] sm:$0xff] }
  0x42   : > { %503 = vmatpush.bf16.msra.mxu2 %v1182_v19  ;;  %v1290_v44 = vld [vmem:[#allocation7 + $0x1] ss:$0 sm:$0xff]  ;;  %v1185_v48 = vld [vmem:[#allocation5 + $0x88] sm:$0xff]  ;;  %v1199_v60 = vld [vmem:[#allocation5 + $0xf8] sm:$0xff]  ;;  %p1438_p9 = pnand %p1437_p7, %p1433_p5 }
  0x43   : > { %v1184_v56 = vld [vmem:[#allocation5 + $0x80] sm:$0xff]  ;;  %v1198_v61 = vld [vmem:[#allocation5 + $0xf0] sm:$0xff]  ;;  %v1197_v62 = vld [vmem:[#allocation5 + $0xe8] sm:$0xff] }
  0x44   : > { %354 = vmatpush.bf16.msra.mxu0 %v1172_v6  ;;  %v1196_v63 = vld [vmem:[#allocation5 + $0xe0] sm:$0xff]  ;;  %v1195_v0 = vld [vmem:[#allocation5 + $0xd8] sm:$0xff]  ;;  %v1206_v18 = vld [vmem:[#allocation5 + $0x130] sm:$0xff] }
  0x45   : > { %421 = vmatpush.bf16.msra.mxu1 %v1164_v7  ;;  %524 = vmatpush.bf16.msra.mxu3 %v1164_v7  ;;  %v1291_v1 = vld [vmem:[#allocation7 + $0x2] ss:$0 sm:$0xff]  ;;  %v1205_v19 = vld [vmem:[#allocation5 + $0x128] sm:$0xff] }
  0x46   : > { %504 = vmatpush.bf16.msra.mxu2 %v1181_v20  ;;  %v1192_v13 = vld [vmem:[#allocation5 + $0xc0] sm:$0xff] }
  0x47   : > { %v1204_v20 = vld [vmem:[#allocation5 + $0x120] sm:$0xff] }
  0x48   : > { %355 = vmatpush.bf16.msra.mxu0 %v1171_v8 }
  0x49   : > { %422 = vmatpush.bf16.msra.mxu1 %v1163_v9  ;;  %525 = vmatpush.bf16.msra.mxu3 %v1163_v9 }
  0x4a   : > { %505 = vmatpush.bf16.msra.mxu2 %v1180_v21  ;;  %v1203_v21 = vld [vmem:[#allocation5 + $0x118] sm:$0xff] }
  0x4c   : > { %356 = vmatpush.bf16.msra.mxu0 %v1170_v10 }
  0x4d   : > { %423 = vmatpush.bf16.msra.mxu1 %v1162_v15  ;;  %526 = vmatpush.bf16.msra.mxu3 %v1162_v15 }
  0x4e   : > { %506 = vmatpush.bf16.msra.mxu2 %v1179_v22  ;;  %v1292_v22 = vld [vmem:[#allocation7 + $0x3] ss:$0 sm:$0xff] }
  0x50   : > { %357 = vmatpush.bf16.msra.mxu0 %v1169_v11 }
  0x51   : > { %424 = vmatpush.bf16.msra.mxu1 %v1161_v16  ;;  %527 = vmatpush.bf16.msra.mxu3 %v1161_v16 }
  0x52   : > { %507 = vmatpush.bf16.msra.mxu2 %v1178_v24 }
  0x54   : > { %358 = vmatpush.bf16.msra.mxu0 %v1168_v12 }
  0x55   : > { %425 = vmatpush.bf16.msra.mxu1 %v1160_v17  ;;  %528 = vmatpush.bf16.msra.mxu3 %v1160_v17 }
  0x56   : > { %508 = vmatpush.bf16.msra.mxu2 %v1177_v27 }
  0x57   : > { %359 = vmatmul.bf16.vlgmr.msra.gmra.mxu0 %v282_v14 }
  0x58   : > { %605 = vmatpush.bf16.msrb.mxu0 %v1191_v39 }
  0x59   : > { %624 = vmatpush.bf16.msrb.mxu1 %v1167_v2  ;;  %727 = vmatpush.bf16.msrb.mxu3 %v1167_v2  ;;  %v1194_v2 = vld [vmem:[#allocation5 + $0xd0] sm:$0xff] }
  0x5a   : > { %509 = vmatpush.bf16.msra.mxu2 %v1176_v35 }
  0x5c   : > { %606 = vmatpush.bf16.msrb.mxu0 %v1190_v40 }
  0x5d   : > { %625 = vmatpush.bf16.msrb.mxu1 %v1166_v3  ;;  %728 = vmatpush.bf16.msrb.mxu3 %v1166_v3 }
  0x5e   : > { %708 = vmatpush.bf16.msrb.mxu2 %v1199_v60 }
  0x60   : > { %607 = vmatpush.bf16.msrb.mxu0 %v1189_v41 }
  0x61   : > { %626 = vmatpush.bf16.msrb.mxu1 %v1165_v5  ;;  %729 = vmatpush.bf16.msrb.mxu3 %v1165_v5  ;;  %v1193_v5 = vld [vmem:[#allocation5 + $0xc8] sm:$0xff] }
  0x62   : > { %709 = vmatpush.bf16.msrb.mxu2 %v1198_v61 }
  0x64   : > { %608 = vmatpush.bf16.msrb.mxu0 %v1188_v42 }
  0x65   : > { %627 = vmatpush.bf16.msrb.mxu1 %v1164_v7  ;;  %730 = vmatpush.bf16.msrb.mxu3 %v1164_v7 }
  0x66   : > { %710 = vmatpush.bf16.msrb.mxu2 %v1197_v62 }
  0x68   : > { %609 = vmatpush.bf16.msrb.mxu0 %v1187_v43 }
  0x69   : > { %628 = vmatpush.bf16.msrb.mxu1 %v1163_v9  ;;  %731 = vmatpush.bf16.msrb.mxu3 %v1163_v9 }
  0x6a   : > { %711 = vmatpush.bf16.msrb.mxu2 %v1196_v63 }
  0x6c   : > { %610 = vmatpush.bf16.msrb.mxu0 %v1186_v45 }
  0x6d   : > { %629 = vmatpush.bf16.msrb.mxu1 %v1162_v15  ;;  %732 = vmatpush.bf16.msrb.mxu3 %v1162_v15 }
  0x6e   : > { %712 = vmatpush.bf16.msrb.mxu2 %v1195_v0 }
  0x70   : > { %611 = vmatpush.bf16.msrb.mxu0 %v1185_v48 }
  0x71   : > { %630 = vmatpush.bf16.msrb.mxu1 %v1161_v16  ;;  %733 = vmatpush.bf16.msrb.mxu3 %v1161_v16 }
  0x72   : > { %713 = vmatpush.bf16.msrb.mxu2 %v1194_v2 }
  0x74   : > { %612 = vmatpush.bf16.msrb.mxu0 %v1184_v56 }
  0x75   : > { %631 = vmatpush.bf16.msrb.mxu1 %v1160_v17  ;;  %734 = vmatpush.bf16.msrb.mxu3 %v1160_v17  ;;  %v1207_v17 = vld [vmem:[#allocation5 + $0x138] sm:$0xff] }
  0x76   : > { %714 = vmatpush.bf16.msrb.mxu2 %v1193_v5 }
  0x78   : > { %811 = vmatpush.bf16.msra.mxu0 %v1207_v17 }
  0x7a   : > { %715 = vmatpush.bf16.msrb.mxu2 %v1192_v13 }
  0x7c   : > { %812 = vmatpush.bf16.msra.mxu0 %v1206_v18 }
  0x80   : > { %813 = vmatpush.bf16.msra.mxu0 %v1205_v19 }
  0x84   : > { %814 = vmatpush.bf16.msra.mxu0 %v1204_v20 }
  0x88   : > { %815 = vmatpush.bf16.msra.mxu0 %v1203_v21 }
  0xd4   : > { %v360_v25 = vpop.f32.mrf.mxu0 }
  0xd5   : > { %v361_v26 = vadd.f32 %v1289_v23, %v360_v25  ;;  %v1202_v23 = vld [vmem:[#allocation5 + $0x110] sm:$0xff] }
  0xd6   : > { %816 = vmatpush.bf16.msra.mxu0 %v1202_v23 }
  0xd7   : > { %v991_v28 = vadd.f32 -0.1, %v361_v26  ;;  %v366_v29 = vadd.f32 0.1, %v361_v26  ;;  %v1201_v26 = vld [vmem:[#allocation5 + $0x108] sm:$0xff] }
  0xd9   : > { %v365_v30 = vmax.f32 %v991_v28, 0.0  ;;  %v367_v31 = vmin.f32 %v366_v29, 0.0 }
  0xda   : > { %817 = vmatpush.bf16.msra.mxu0 %v1201_v26 }
  0xdb   : > { %v368_v32 = vadd.f32 %v367_v31, %v365_v30 }
  0xdc   : > { %v362_v33 = vpop.f32.mrf.mxu0 }
  0xdd   : > { %v369_v34 = vpack.c.bf16 %v368_v32, %v368_v32 }
  0xdf   : > { %426 = vmatmul.bf16.vlgmr.msra.gmra.mxu1 %v369_v34  ;;  %v1200_v34 = vld [vmem:[#allocation5 + $0x100] sm:$0xff] }
  0xe0   : > { %818 = vmatpush.bf16.msra.mxu0 %v1200_v34 }
 0x15c   : > { %v427_v36 = vpop.f32.mrf.mxu1 }
 0x15d   : > { %v431_v37 = vpack.c.bf16 %v427_v36, %v427_v36 }
 0x15f   : > { %510 = vmatmul.bf16.vlgmr.msra.gmra.mxu2 %v431_v37 }
 0x164   : > { %v429_v38 = vpop.f32.mrf.mxu1 }
 0x165   : > { %v1293_v38 = vld [vmem:[#allocation7 + $0x4] ss:$0 sm:$0xff] }
 0x1e2   : > { %v511_v46 = vpop.f32.mrf.mxu2 }
 0x1e3   : > { %v512_v47 = vadd.f32 %v1290_v44, %v511_v46 }
 0x1e5   : > { %v1056_v49 = vadd.f32 -0.1, %v512_v47  ;;  %v517_v50 = vadd.f32 0.1, %v512_v47 }
 0x1e7   : > { %v516_v51 = vmax.f32 %v1056_v49, 0.0  ;;  %v518_v52 = vmin.f32 %v517_v50, 0.0 }
 0x1e9   : > { %v519_v53 = vadd.f32 %v518_v52, %v516_v51 }
 0x1ea   : > { %v513_v54 = vpop.f32.mrf.mxu2 }
 0x1eb   : > { %v520_v55 = vpack.c.bf16 %v519_v53, %v519_v53 }
 0x1ed   : > { %529 = vmatmul.bf16.vlgmr.msra.gmra.mxu3 %v520_v55 }
 0x270   : > { %v530_v57 = vpop.f32.mrf.mxu3 }
 0x271   : > { %v534_v58 = vpack.c.bf16 %v530_v57, %v530_v57 }
 0x273   : > { %613 = vmatmul.bf16.vlgmr.msrb.gmra.mxu0 %v534_v58 }
 0x278   : > { %v532_v59 = vpop.f32.mrf.mxu3 }
 0x2f0   : > { %v614_v3 = vpop.f32.mrf.mxu0 }
 0x2f1   : > { %v615_v4 = vadd.f32 %v1291_v1, %v614_v3 }
 0x2f3   : > { %v1089_v6 = vadd.f32 -0.1, %v615_v4  ;;  %v620_v7 = vadd.f32 0.1, %v615_v4 }
 0x2f5   : > { %v619_v8 = vmax.f32 %v1089_v6, 0.0  ;;  %v621_v9 = vmin.f32 %v620_v7, 0.0 }
 0x2f7   : > { %v622_v10 = vadd.f32 %v621_v9, %v619_v8 }
 0x2f8   : > { %v616_v11 = vpop.f32.mrf.mxu0 }
 0x2f9   : > { %v623_v12 = vpack.c.bf16 %v622_v10, %v622_v10 }
 0x2fb   : > { %632 = vmatmul.bf16.vlgmr.msrb.gmra.mxu1 %v623_v12 }
 0x378   : > { %v633_v14 = vpop.f32.mrf.mxu1 }
 0x379   : > { %v637_v15 = vpack.c.bf16 %v633_v14, %v633_v14 }
 0x37b   : > { %716 = vmatmul.bf16.vlgmr.msrb.gmra.mxu2 %v637_v15 }
 0x380   : > { %v635_v16 = vpop.f32.mrf.mxu1 }
 0x3fe   : > { %v717_v24 = vpop.f32.mrf.mxu2 }
 0x3ff   : > { %v718_v25 = vadd.f32 %v1292_v22, %v717_v24 }
 0x401   : > { %v1122_v27 = vadd.f32 -0.1, %v718_v25  ;;  %v723_v28 = vadd.f32 0.1, %v718_v25 }
 0x403   : > { %v722_v29 = vmax.f32 %v1122_v27, 0.0  ;;  %v724_v30 = vmin.f32 %v723_v28, 0.0 }
 0x405   : > { %v725_v31 = vadd.f32 %v724_v30, %v722_v29 }
 0x406   : > { %v719_v32 = vpop.f32.mrf.mxu2 }
 0x407   : > { %v726_v33 = vpack.c.bf16 %v725_v31, %v725_v31 }
 0x409   : > { %735 = vmatmul.bf16.vlgmr.msrb.gmra.mxu3 %v726_v33 }
 0x48c   : > { %v736_v35 = vpop.f32.mrf.mxu3 }
 0x48d   : > { %v740_v36 = vpack.c.bf16 %v736_v35, %v736_v35 }
 0x48f   : > { %819 = vmatmul.bf16.vlgmr.msra.gmra.mxu0 %v740_v36 }
 0x494   : > { %v738_v37 = vpop.f32.mrf.mxu3 }
 0x50c   : > { %v820_v39 = vpop.f32.mrf.mxu0 }
 0x50d   : > { %v821_v40 = vadd.f32 %v1293_v38, %v820_v39 }
 0x50f   : > { %v1155_v41 = vadd.f32 -0.1, %v821_v40  ;;  %v826_v42 = vadd.f32 0.1, %v821_v40 }
 0x511   : > { %v825_v43 = vmax.f32 %v1155_v41, 0.0  ;;  %v827_v44 = vmin.f32 %v826_v42, 0.0 }
 0x513   : > { %v828_v45 = vadd.f32 %v827_v44, %v825_v43 }
 0x514   : > { %v822_v46 = vpop.f32.mrf.mxu0 }
 0x515   : > { %829 = vst [vmem:[%s264_s12] sm:$0xff] %v828_v45 }
 0x516   : > { %1441 = shalt.err (!%p1438_p9)
}
 0x517   : > { %1222 = dma.vmem_to_hbm [thread:$0]  (%p1598_p13), %s844_s13, 128, %s846_s14, %s831_s22  }
 0x518 PF: > { %s857_s28 = sand.u32 1, %s1476_s15   ;;  %p1696_p10 = scmp.ge.s32.totalorder %s1488_s18, 2 }
 0x519   : > { %s858_s8 = scalar_lea.sflag [#allocation4], %s857_s28 }
 0x51a   : > { %p1239_p11 = pnand %p1696_p10, %p1603_p4 }
 0x51c   : > { %p1240_p0 = pneg %p1239_p11 }
 0x51e   : > { %1471 = dma.done.wait (%p1240_p0), %s858_s8, 128  }
 0x51f   : > { %1473 = vsyncadd (%p1240_p0), %s858_s8, 4294967168  ;;  %p19_p2 = scmp.ge.s32.totalorder %s1578_s20, 4   ;;  %s1697_s15 = smov %s1480_s16 }
 0x520   : > { %s1698_s16 = smov %s1484_s17  ;;  %s1699_s17 = smov %s1590_s25 }
 0x521   : > { %s1700_s18 = smov %s1578_s20  ;;  %21 = sbr.rel (!%p19_p2) target bundleno = 7 (0x7), region = 101 }
 0x526   :  { %864 = vsyncpa [#allocation3], 1 }
 0x527   :  { %866 = vsyncpa [#allocation3 + $0x1], 1 }
 0x528   :  { %867 = vsyncpa [#allocation6], 1 }
 0x529   :  { %868 = vsyncpa [#allocation9], 1 }
 0x52a   :  { %869 = vsyncpa [#allocation4], 1 }
 0x52b   :  { %871 = vsyncpa [#allocation4 + $0x1], 1 }

</bundles_post_ra>
